<compile_context>
chip_gen: v5e
topology: v5e:2x2
jax: 0.10.0
libtpu: 0.0.40
codegen_flags: <defaults>
</compile_context>

<pallas_src>
import math

import jax
import jax.numpy as jnp
import numpy as np
from jax.experimental import pallas as pl
from jax.experimental.pallas import tpu as pltpu


# --------------------------------------------------------------------------- #
# Pallas kernel: whole sequence in one invocation (no grid).
# --------------------------------------------------------------------------- #
def _decoder_kernel(ids_ref, emb_ref, h0_ref,
                    w_ih_ref, w_hh_ref, b_ih_ref, b_hh_ref,
                    w_out_ref, b_out_ref,
                    out_ref, hfin_ref):
    S, B = ids_ref.shape
    V, H = emb_ref.shape

    # ---- fused embedding lookup as one-hot matmul (MXU, no dynamic gather) ----
    ids = ids_ref[...]                                              # (S, B) int32
    iota = jax.lax.broadcasted_iota(jnp.int32, (S, B, V), 2)
    onehot = (iota == ids[:, :, None]).astype(jnp.float32)          # (S, B, V)
    x = jnp.dot(onehot.reshape(S * B, V), emb_ref[...],
                preferred_element_type=jnp.float32)                 # (S*B, H)

    # ---- input-side gate pre-activations for ALL time steps (one matmul/gate) ----
    # Gate order matches PyTorch GRU: r, z, n.  Biases folded here once.
    gi_r = jnp.dot(x, w_ih_ref[0], preferred_element_type=jnp.float32) + b_ih_ref[0]
    gi_z = jnp.dot(x, w_ih_ref[1], preferred_element_type=jnp.float32) + b_ih_ref[1]
    gi_n = jnp.dot(x, w_ih_ref[2], preferred_element_type=jnp.float32) + b_ih_ref[2]

    # Hoist weight/bias reads out of the time loop.
    w_hh_r, w_hh_z, w_hh_n = w_hh_ref[0], w_hh_ref[1], w_hh_ref[2]
    b_hh_r, b_hh_z, b_hh_n = b_hh_ref[0], b_hh_ref[1], b_hh_ref[2]

    h = h0_ref[...].astype(jnp.float32)                             # (B, H)
    h_last_rows = []
    # Static unroll over time: S is small, the recurrence is inherently serial, and this
    # gives the scheduler full visibility with zero per-step grid/DMA overhead.
    for t in range(S):
        gh_r = jnp.dot(h, w_hh_r, preferred_element_type=jnp.float32) + b_hh_r
        gh_z = jnp.dot(h, w_hh_z, preferred_element_type=jnp.float32) + b_hh_z
        gh_n = jnp.dot(h, w_hh_n, preferred_element_type=jnp.float32) + b_hh_n
        r = jax.nn.sigmoid(gi_r[t * B:(t + 1) * B] + gh_r)
        z = jax.nn.sigmoid(gi_z[t * B:(t + 1) * B] + gh_z)
        n = jnp.tanh(gi_n[t * B:(t + 1) * B] + r * gh_n)
        h = (1.0 - z) * n + z * h                                   # (B, H)
        # PyTorch quirk: self.out(output[:, -1]) keeps the LAST batch element per step.
        h_last_rows.append(h[B - 1:B, :])

    # Final hidden state: written once.
    hfin_ref[...] = h.astype(hfin_ref.dtype)

    # ---- single batched output Linear, lane-dense (O padded to 128), written once ----
    h_sel = jnp.concatenate(h_last_rows, axis=0)                    # (S, H)
    logits = jnp.dot(h_sel, w_out_ref[...],
                     preferred_element_type=jnp.float32) + b_out_ref[...]
    out_ref[...] = logits.astype(out_ref.dtype)


# --------------------------------------------------------------------------- #
# Wrapper
# --------------------------------------------------------------------------- #
def decoder_rnn_forward(input_ids, hidden, params):
    """input_ids: (S, B) int32, hidden: (1, B, H) f32 -> ((S, O) f32, (1, B, H) f32)."""
    S, B = input_ids.shape
    H = params["w_hh"].shape[-1]
    O = params["w_out"].shape[1]
    O_pad = ((O + 127) // 128) * 128        # lane-dense output block

    w_out_p = jnp.pad(params["w_out"].astype(jnp.float32), ((0, 0), (0, O_pad - O)))
    b_out_p = jnp.pad(params["b_out"].astype(jnp.float32), ((0, 0), (0, O_pad - O)))

    out_padded, h_final = pl.pallas_call(
        _decoder_kernel,
        out_shape=(
            jax.ShapeDtypeStruct((S, O_pad), jnp.float32),
            jax.ShapeDtypeStruct((B, H), jnp.float32),
        ),
        # Everything (ids, embedding table, weights, h0) is tiny and lives as full-array
        # VMEM blocks; keep an explicit, generation-safe VMEM budget (fits v7x's 64 MiB).
        compiler_params=pltpu.CompilerParams(vmem_limit_bytes=32 * 1024 * 1024),
    )(input_ids.astype(jnp.int32),
      params["embedding"].astype(jnp.float32),
      hidden[0].astype(jnp.float32),
      params["w_ih"], params["w_hh"], params["b_ih"], params["b_hh"],
      w_out_p, b_out_p)

    return out_padded[:, :O], h_final[None]


# --------------------------------------------------------------------------- #
# Pure-JAX reference (mirrors torch.nn.GRU semantics) for validation.
# --------------------------------------------------------------------------- #
def decoder_rnn_reference(input_ids, hidden, params):
    x = jnp.take(params["embedding"], input_ids, axis=0)            # (S, B, H)
    h = hidden[0]
    outs = []
    for t in range(x.shape[0]):
        gi_r = x[t] @ params["w_ih"][0] + params["b_ih"][0]
        gi_z = x[t] @ params["w_ih"][1] + params["b_ih"][1]
        gi_n = x[t] @ params["w_ih"][2] + params["b_ih"][2]
        gh_r = h @ params["w_hh"][0] + params["b_hh"][0]
        gh_z = h @ params["w_hh"][1] + params["b_hh"][1]
        gh_n = h @ params["w_hh"][2] + params["b_hh"][2]
        r = jax.nn.sigmoid(gi_r + gh_r)
        z = jax.nn.sigmoid(gi_z + gh_z)
        n = jnp.tanh(gi_n + r * gh_n)
        h = (1.0 - z) * n + z * h
        outs.append(h)
    output = jnp.stack(outs)                                        # (S, B, H)
    logits = output[:, -1] @ params["w_out"] + params["b_out"][0]
    return logits, h[None]


# --------------------------------------------------------------------------- #
# Deterministic parameter init (shapes from DecoderRNN.__init__).
# Weights stored transposed vs. PyTorch and split per gate: (3, H, H), order [r, z, n].
# --------------------------------------------------------------------------- #
def init_params(key, output_size, hidden_size, n_letters):
    k = 1.0 / math.sqrt(hidden_size)
    keys = jax.random.split(key, 7)
    u = lambda kk, shape: jax.random.uniform(kk, shape, jnp.float32, -k, k)
    return {
        "embedding": jax.random.normal(keys[0], (n_letters, hidden_size), jnp.float32),
        "w_ih": u(keys[1], (3, hidden_size, hidden_size)),
        "w_hh": u(keys[2], (3, hidden_size, hidden_size)),
        "b_ih": u(keys[3], (3, 1, hidden_size)),
        "b_hh": u(keys[4], (3, 1, hidden_size)),
        "w_out": u(keys[5], (hidden_size, output_size)),
        "b_out": u(keys[6], (1, output_size)),
    }


if __name__ == "__main__":
    SEQ, BATCH, HIDDEN, OUT, N_LETTERS = 8, 2, 32, 10, 20

    key = jax.random.PRNGKey(0)
    k_par, k_inp, k_hid = jax.random.split(key, 3)

    params = init_params(k_par, OUT, HIDDEN, N_LETTERS)
    input_ids = jax.random.randint(k_inp, (SEQ, BATCH), 0, N_LETTERS, dtype=jnp.int32)
    hidden = jax.random.normal(k_hid, (1, BATCH, HIDDEN), jnp.float32)

    # `lang` and `ennoder_outputs` are unused in the PyTorch forward; omitted here.
    logits, h_final = decoder_rnn_forward(input_ids, hidden, params)
    jax.block_until_ready((logits, h_final))

    ref_logits, ref_h = decoder_rnn_reference(input_ids, hidden, params)
    np.testing.assert_allclose(np.asarray(logits), np.asarray(ref_logits),
                               rtol=1e-5, atol=1e-5)
    np.testing.assert_allclose(np.asarray(h_final), np.asarray(ref_h),
                               rtol=1e-5, atol=1e-5)

    print("KERNEL_OK")
</pallas_src>

<mosaic_0001>
module attributes {stable_mosaic.version = 11 : i64} {
  func.func @_decoder_kernel(%arg0: memref<8x2xi32, #tpu.memory_space<vmem>>, %arg1: memref<20x32xf32, #tpu.memory_space<vmem>>, %arg2: memref<2x32xf32, #tpu.memory_space<vmem>>, %arg3: memref<3x32x32xf32, #tpu.memory_space<vmem>>, %arg4: memref<3x32x32xf32, #tpu.memory_space<vmem>>, %arg5: memref<3x1x32xf32, #tpu.memory_space<vmem>>, %arg6: memref<3x1x32xf32, #tpu.memory_space<vmem>>, %arg7: memref<32x128xf32, #tpu.memory_space<vmem>>, %arg8: memref<1x128xf32, #tpu.memory_space<vmem>>, %arg9: memref<8x128xf32, #tpu.memory_space<vmem>>, %arg10: memref<2x32xf32, #tpu.memory_space<vmem>>) attributes {dimension_semantics = [], scalar_prefetch = 0 : i64, scratch_operands = 0 : i64, tpu.core_type = #tpu.core_type<tc>} {
    %c0 = arith.constant 0 : index
    %c0_0 = arith.constant 0 : index
    %0 = vector.load %arg0[%c0, %c0_0] : memref<8x2xi32, #tpu.memory_space<vmem>>, vector<8x2xi32>
    %1 = tpu.iota {dimensions = array<i32: 2>} : vector<8x2x20xi32>
    %2 = vector.shape_cast %0 : vector<8x2xi32> to vector<8x2x1xi32>
    %3 = vector.broadcast %2 : vector<8x2x1xi32> to vector<8x2x20xi32>
    %4 = arith.cmpi eq, %1, %3 : vector<8x2x20xi32>
    %5 = arith.extui %4 : vector<8x2x20xi1> to vector<8x2x20xi32>
    %6 = arith.sitofp %5 : vector<8x2x20xi32> to vector<8x2x20xf32>
    %7 = vector.shape_cast %6 : vector<8x2x20xf32> to vector<16x20xf32>
    %c0_1 = arith.constant 0 : index
    %c0_2 = arith.constant 0 : index
    %8 = vector.load %arg1[%c0_1, %c0_2] : memref<20x32xf32, #tpu.memory_space<vmem>>, vector<20x32xf32>
    %cst = arith.constant dense<0.000000e+00> : vector<16x32xf32>
    %9 = tpu.matmul %7, %8, %cst {dimension_numbers = #tpu.dot_dimension_numbers<[1], [0], [0], [1], [0, 0, 1, 1], [], []>} : vector<16x20xf32>, vector<20x32xf32>, vector<16x32xf32> -> vector<16x32xf32>
    %c0_3 = arith.constant 0 : index
    %c0_4 = arith.constant 0 : index
    %c0_5 = arith.constant 0 : index
    %10 = vector.load %arg3[%c0_3, %c0_4, %c0_5] : memref<3x32x32xf32, #tpu.memory_space<vmem>>, vector<1x32x32xf32>
    %11 = vector.shape_cast %10 : vector<1x32x32xf32> to vector<32x32xf32>
    %cst_6 = arith.constant dense<0.000000e+00> : vector<16x32xf32>
    %12 = tpu.matmul %9, %11, %cst_6 {dimension_numbers = #tpu.dot_dimension_numbers<[1], [0], [0], [1], [0, 0, 1, 1], [], []>} : vector<16x32xf32>, vector<32x32xf32>, vector<16x32xf32> -> vector<16x32xf32>
    %c0_7 = arith.constant 0 : index
    %c0_8 = arith.constant 0 : index
    %c0_9 = arith.constant 0 : index
    %13 = vector.load %arg5[%c0_7, %c0_8, %c0_9] : memref<3x1x32xf32, #tpu.memory_space<vmem>>, vector<1x1x32xf32>
    %14 = vector.shape_cast %13 : vector<1x1x32xf32> to vector<1x32xf32>
    %15 = vector.broadcast %14 : vector<1x32xf32> to vector<16x32xf32>
    %16 = arith.addf %12, %15 : vector<16x32xf32>
    %c1 = arith.constant 1 : index
    %c0_10 = arith.constant 0 : index
    %c0_11 = arith.constant 0 : index
    %17 = vector.load %arg3[%c1, %c0_10, %c0_11] : memref<3x32x32xf32, #tpu.memory_space<vmem>>, vector<1x32x32xf32>
    %18 = vector.shape_cast %17 : vector<1x32x32xf32> to vector<32x32xf32>
    %cst_12 = arith.constant dense<0.000000e+00> : vector<16x32xf32>
    %19 = tpu.matmul %9, %18, %cst_12 {dimension_numbers = #tpu.dot_dimension_numbers<[1], [0], [0], [1], [0, 0, 1, 1], [], []>} : vector<16x32xf32>, vector<32x32xf32>, vector<16x32xf32> -> vector<16x32xf32>
    %c1_13 = arith.constant 1 : index
    %c0_14 = arith.constant 0 : index
    %c0_15 = arith.constant 0 : index
    %20 = vector.load %arg5[%c1_13, %c0_14, %c0_15] : memref<3x1x32xf32, #tpu.memory_space<vmem>>, vector<1x1x32xf32>
    %21 = vector.shape_cast %20 : vector<1x1x32xf32> to vector<1x32xf32>
    %22 = vector.broadcast %21 : vector<1x32xf32> to vector<16x32xf32>
    %23 = arith.addf %19, %22 : vector<16x32xf32>
    %c2 = arith.constant 2 : index
    %c0_16 = arith.constant 0 : index
    %c0_17 = arith.constant 0 : index
    %24 = vector.load %arg3[%c2, %c0_16, %c0_17] : memref<3x32x32xf32, #tpu.memory_space<vmem>>, vector<1x32x32xf32>
    %25 = vector.shape_cast %24 : vector<1x32x32xf32> to vector<32x32xf32>
    %cst_18 = arith.constant dense<0.000000e+00> : vector<16x32xf32>
    %26 = tpu.matmul %9, %25, %cst_18 {dimension_numbers = #tpu.dot_dimension_numbers<[1], [0], [0], [1], [0, 0, 1, 1], [], []>} : vector<16x32xf32>, vector<32x32xf32>, vector<16x32xf32> -> vector<16x32xf32>
    %c2_19 = arith.constant 2 : index
    %c0_20 = arith.constant 0 : index
    %c0_21 = arith.constant 0 : index
    %27 = vector.load %arg5[%c2_19, %c0_20, %c0_21] : memref<3x1x32xf32, #tpu.memory_space<vmem>>, vector<1x1x32xf32>
    %28 = vector.shape_cast %27 : vector<1x1x32xf32> to vector<1x32xf32>
    %29 = vector.broadcast %28 : vector<1x32xf32> to vector<16x32xf32>
    %30 = arith.addf %26, %29 : vector<16x32xf32>
    %c0_22 = arith.constant 0 : index
    %c0_23 = arith.constant 0 : index
    %c0_24 = arith.constant 0 : index
    %31 = vector.load %arg4[%c0_22, %c0_23, %c0_24] : memref<3x32x32xf32, #tpu.memory_space<vmem>>, vector<1x32x32xf32>
    %32 = vector.shape_cast %31 : vector<1x32x32xf32> to vector<32x32xf32>
    %c1_25 = arith.constant 1 : index
    %c0_26 = arith.constant 0 : index
    %c0_27 = arith.constant 0 : index
    %33 = vector.load %arg4[%c1_25, %c0_26, %c0_27] : memref<3x32x32xf32, #tpu.memory_space<vmem>>, vector<1x32x32xf32>
    %34 = vector.shape_cast %33 : vector<1x32x32xf32> to vector<32x32xf32>
    %c2_28 = arith.constant 2 : index
    %c0_29 = arith.constant 0 : index
    %c0_30 = arith.constant 0 : index
    %35 = vector.load %arg4[%c2_28, %c0_29, %c0_30] : memref<3x32x32xf32, #tpu.memory_space<vmem>>, vector<1x32x32xf32>
    %36 = vector.shape_cast %35 : vector<1x32x32xf32> to vector<32x32xf32>
    %c0_31 = arith.constant 0 : index
    %c0_32 = arith.constant 0 : index
    %c0_33 = arith.constant 0 : index
    %37 = vector.load %arg6[%c0_31, %c0_32, %c0_33] : memref<3x1x32xf32, #tpu.memory_space<vmem>>, vector<1x1x32xf32>
    %38 = vector.shape_cast %37 : vector<1x1x32xf32> to vector<1x32xf32>
    %c1_34 = arith.constant 1 : index
    %c0_35 = arith.constant 0 : index
    %c0_36 = arith.constant 0 : index
    %39 = vector.load %arg6[%c1_34, %c0_35, %c0_36] : memref<3x1x32xf32, #tpu.memory_space<vmem>>, vector<1x1x32xf32>
    %40 = vector.shape_cast %39 : vector<1x1x32xf32> to vector<1x32xf32>
    %c2_37 = arith.constant 2 : index
    %c0_38 = arith.constant 0 : index
    %c0_39 = arith.constant 0 : index
    %41 = vector.load %arg6[%c2_37, %c0_38, %c0_39] : memref<3x1x32xf32, #tpu.memory_space<vmem>>, vector<1x1x32xf32>
    %42 = vector.shape_cast %41 : vector<1x1x32xf32> to vector<1x32xf32>
    %c0_40 = arith.constant 0 : index
    %c0_41 = arith.constant 0 : index
    %43 = vector.load %arg2[%c0_40, %c0_41] : memref<2x32xf32, #tpu.memory_space<vmem>>, vector<2x32xf32>
    %cst_42 = arith.constant dense<0.000000e+00> : vector<2x32xf32>
    %44 = tpu.matmul %43, %32, %cst_42 {dimension_numbers = #tpu.dot_dimension_numbers<[1], [0], [0], [1], [0, 0, 1, 1], [], []>} : vector<2x32xf32>, vector<32x32xf32>, vector<2x32xf32> -> vector<2x32xf32>
    %45 = vector.broadcast %38 : vector<1x32xf32> to vector<2x32xf32>
    %46 = arith.addf %44, %45 : vector<2x32xf32>
    %cst_43 = arith.constant dense<0.000000e+00> : vector<2x32xf32>
    %47 = tpu.matmul %43, %34, %cst_43 {dimension_numbers = #tpu.dot_dimension_numbers<[1], [0], [0], [1], [0, 0, 1, 1], [], []>} : vector<2x32xf32>, vector<32x32xf32>, vector<2x32xf32> -> vector<2x32xf32>
    %48 = vector.broadcast %40 : vector<1x32xf32> to vector<2x32xf32>
    %49 = arith.addf %47, %48 : vector<2x32xf32>
    %cst_44 = arith.constant dense<0.000000e+00> : vector<2x32xf32>
    %50 = tpu.matmul %43, %36, %cst_44 {dimension_numbers = #tpu.dot_dimension_numbers<[1], [0], [0], [1], [0, 0, 1, 1], [], []>} : vector<2x32xf32>, vector<32x32xf32>, vector<2x32xf32> -> vector<2x32xf32>
    %51 = vector.broadcast %42 : vector<1x32xf32> to vector<2x32xf32>
    %52 = arith.addf %50, %51 : vector<2x32xf32>
    %53 = vector.extract_strided_slice %16 {offsets = [0, 0], sizes = [2, 32], strides = [1, 1]} : vector<16x32xf32> to vector<2x32xf32>
    %54 = arith.addf %53, %46 : vector<2x32xf32>
    %55 = arith.negf %54 : vector<2x32xf32>
    %56 = math.exp %55 : vector<2x32xf32>
    %cst_45 = arith.constant 1.000000e+00 : f32
    %57 = vector.broadcast %cst_45 : f32 to vector<2x32xf32>
    %58 = arith.addf %57, %56 : vector<2x32xf32>
    %59 = arith.divf %57, %58 : vector<2x32xf32>
    %60 = vector.extract_strided_slice %23 {offsets = [0, 0], sizes = [2, 32], strides = [1, 1]} : vector<16x32xf32> to vector<2x32xf32>
    %61 = arith.addf %60, %49 : vector<2x32xf32>
    %62 = arith.negf %61 : vector<2x32xf32>
    %63 = math.exp %62 : vector<2x32xf32>
    %cst_46 = arith.constant 1.000000e+00 : f32
    %64 = vector.broadcast %cst_46 : f32 to vector<2x32xf32>
    %65 = arith.addf %64, %63 : vector<2x32xf32>
    %66 = arith.divf %64, %65 : vector<2x32xf32>
    %67 = vector.extract_strided_slice %30 {offsets = [0, 0], sizes = [2, 32], strides = [1, 1]} : vector<16x32xf32> to vector<2x32xf32>
    %68 = arith.mulf %59, %52 : vector<2x32xf32>
    %69 = arith.addf %67, %68 : vector<2x32xf32>
    %70 = math.tanh %69 : vector<2x32xf32>
    %cst_47 = arith.constant 1.000000e+00 : f32
    %71 = vector.broadcast %cst_47 : f32 to vector<2x32xf32>
    %72 = arith.subf %71, %66 : vector<2x32xf32>
    %73 = arith.mulf %72, %70 : vector<2x32xf32>
    %74 = arith.mulf %66, %43 : vector<2x32xf32>
    %75 = arith.addf %73, %74 : vector<2x32xf32>
    %76 = vector.extract_strided_slice %75 {offsets = [1, 0], sizes = [1, 32], strides = [1, 1]} : vector<2x32xf32> to vector<1x32xf32>
    %cst_48 = arith.constant dense<0.000000e+00> : vector<2x32xf32>
    %77 = tpu.matmul %75, %32, %cst_48 {dimension_numbers = #tpu.dot_dimension_numbers<[1], [0], [0], [1], [0, 0, 1, 1], [], []>} : vector<2x32xf32>, vector<32x32xf32>, vector<2x32xf32> -> vector<2x32xf32>
    %78 = vector.broadcast %38 : vector<1x32xf32> to vector<2x32xf32>
    %79 = arith.addf %77, %78 : vector<2x32xf32>
    %cst_49 = arith.constant dense<0.000000e+00> : vector<2x32xf32>
    %80 = tpu.matmul %75, %34, %cst_49 {dimension_numbers = #tpu.dot_dimension_numbers<[1], [0], [0], [1], [0, 0, 1, 1], [], []>} : vector<2x32xf32>, vector<32x32xf32>, vector<2x32xf32> -> vector<2x32xf32>
    %81 = vector.broadcast %40 : vector<1x32xf32> to vector<2x32xf32>
    %82 = arith.addf %80, %81 : vector<2x32xf32>
    %cst_50 = arith.constant dense<0.000000e+00> : vector<2x32xf32>
    %83 = tpu.matmul %75, %36, %cst_50 {dimension_numbers = #tpu.dot_dimension_numbers<[1], [0], [0], [1], [0, 0, 1, 1], [], []>} : vector<2x32xf32>, vector<32x32xf32>, vector<2x32xf32> -> vector<2x32xf32>
    %84 = vector.broadcast %42 : vector<1x32xf32> to vector<2x32xf32>
    %85 = arith.addf %83, %84 : vector<2x32xf32>
    %86 = vector.extract_strided_slice %16 {offsets = [2, 0], sizes = [2, 32], strides = [1, 1]} : vector<16x32xf32> to vector<2x32xf32>
    %87 = arith.addf %86, %79 : vector<2x32xf32>
    %88 = arith.negf %87 : vector<2x32xf32>
    %89 = math.exp %88 : vector<2x32xf32>
    %cst_51 = arith.constant 1.000000e+00 : f32
    %90 = vector.broadcast %cst_51 : f32 to vector<2x32xf32>
    %91 = arith.addf %90, %89 : vector<2x32xf32>
    %92 = arith.divf %90, %91 : vector<2x32xf32>
    %93 = vector.extract_strided_slice %23 {offsets = [2, 0], sizes = [2, 32], strides = [1, 1]} : vector<16x32xf32> to vector<2x32xf32>
    %94 = arith.addf %93, %82 : vector<2x32xf32>
    %95 = arith.negf %94 : vector<2x32xf32>
    %96 = math.exp %95 : vector<2x32xf32>
    %cst_52 = arith.constant 1.000000e+00 : f32
    %97 = vector.broadcast %cst_52 : f32 to vector<2x32xf32>
    %98 = arith.addf %97, %96 : vector<2x32xf32>
    %99 = arith.divf %97, %98 : vector<2x32xf32>
    %100 = vector.extract_strided_slice %30 {offsets = [2, 0], sizes = [2, 32], strides = [1, 1]} : vector<16x32xf32> to vector<2x32xf32>
    %101 = arith.mulf %92, %85 : vector<2x32xf32>
    %102 = arith.addf %100, %101 : vector<2x32xf32>
    %103 = math.tanh %102 : vector<2x32xf32>
    %cst_53 = arith.constant 1.000000e+00 : f32
    %104 = vector.broadcast %cst_53 : f32 to vector<2x32xf32>
    %105 = arith.subf %104, %99 : vector<2x32xf32>
    %106 = arith.mulf %105, %103 : vector<2x32xf32>
    %107 = arith.mulf %99, %75 : vector<2x32xf32>
    %108 = arith.addf %106, %107 : vector<2x32xf32>
    %109 = vector.extract_strided_slice %108 {offsets = [1, 0], sizes = [1, 32], strides = [1, 1]} : vector<2x32xf32> to vector<1x32xf32>
    %cst_54 = arith.constant dense<0.000000e+00> : vector<2x32xf32>
    %110 = tpu.matmul %108, %32, %cst_54 {dimension_numbers = #tpu.dot_dimension_numbers<[1], [0], [0], [1], [0, 0, 1, 1], [], []>} : vector<2x32xf32>, vector<32x32xf32>, vector<2x32xf32> -> vector<2x32xf32>
    %111 = vector.broadcast %38 : vector<1x32xf32> to vector<2x32xf32>
    %112 = arith.addf %110, %111 : vector<2x32xf32>
    %cst_55 = arith.constant dense<0.000000e+00> : vector<2x32xf32>
    %113 = tpu.matmul %108, %34, %cst_55 {dimension_numbers = #tpu.dot_dimension_numbers<[1], [0], [0], [1], [0, 0, 1, 1], [], []>} : vector<2x32xf32>, vector<32x32xf32>, vector<2x32xf32> -> vector<2x32xf32>
    %114 = vector.broadcast %40 : vector<1x32xf32> to vector<2x32xf32>
    %115 = arith.addf %113, %114 : vector<2x32xf32>
    %cst_56 = arith.constant dense<0.000000e+00> : vector<2x32xf32>
    %116 = tpu.matmul %108, %36, %cst_56 {dimension_numbers = #tpu.dot_dimension_numbers<[1], [0], [0], [1], [0, 0, 1, 1], [], []>} : vector<2x32xf32>, vector<32x32xf32>, vector<2x32xf32> -> vector<2x32xf32>
    %117 = vector.broadcast %42 : vector<1x32xf32> to vector<2x32xf32>
    %118 = arith.addf %116, %117 : vector<2x32xf32>
    %119 = vector.extract_strided_slice %16 {offsets = [4, 0], sizes = [2, 32], strides = [1, 1]} : vector<16x32xf32> to vector<2x32xf32>
    %120 = arith.addf %119, %112 : vector<2x32xf32>
    %121 = arith.negf %120 : vector<2x32xf32>
    %122 = math.exp %121 : vector<2x32xf32>
    %cst_57 = arith.constant 1.000000e+00 : f32
    %123 = vector.broadcast %cst_57 : f32 to vector<2x32xf32>
    %124 = arith.addf %123, %122 : vector<2x32xf32>
    %125 = arith.divf %123, %124 : vector<2x32xf32>
    %126 = vector.extract_strided_slice %23 {offsets = [4, 0], sizes = [2, 32], strides = [1, 1]} : vector<16x32xf32> to vector<2x32xf32>
    %127 = arith.addf %126, %115 : vector<2x32xf32>
    %128 = arith.negf %127 : vector<2x32xf32>
    %129 = math.exp %128 : vector<2x32xf32>
    %cst_58 = arith.constant 1.000000e+00 : f32
    %130 = vector.broadcast %cst_58 : f32 to vector<2x32xf32>
    %131 = arith.addf %130, %129 : vector<2x32xf32>
    %132 = arith.divf %130, %131 : vector<2x32xf32>
    %133 = vector.extract_strided_slice %30 {offsets = [4, 0], sizes = [2, 32], strides = [1, 1]} : vector<16x32xf32> to vector<2x32xf32>
    %134 = arith.mulf %125, %118 : vector<2x32xf32>
    %135 = arith.addf %133, %134 : vector<2x32xf32>
    %136 = math.tanh %135 : vector<2x32xf32>
    %cst_59 = arith.constant 1.000000e+00 : f32
    %137 = vector.broadcast %cst_59 : f32 to vector<2x32xf32>
    %138 = arith.subf %137, %132 : vector<2x32xf32>
    %139 = arith.mulf %138, %136 : vector<2x32xf32>
    %140 = arith.mulf %132, %108 : vector<2x32xf32>
    %141 = arith.addf %139, %140 : vector<2x32xf32>
    %142 = vector.extract_strided_slice %141 {offsets = [1, 0], sizes = [1, 32], strides = [1, 1]} : vector<2x32xf32> to vector<1x32xf32>
    %cst_60 = arith.constant dense<0.000000e+00> : vector<2x32xf32>
    %143 = tpu.matmul %141, %32, %cst_60 {dimension_numbers = #tpu.dot_dimension_numbers<[1], [0], [0], [1], [0, 0, 1, 1], [], []>} : vector<2x32xf32>, vector<32x32xf32>, vector<2x32xf32> -> vector<2x32xf32>
    %144 = vector.broadcast %38 : vector<1x32xf32> to vector<2x32xf32>
    %145 = arith.addf %143, %144 : vector<2x32xf32>
    %cst_61 = arith.constant dense<0.000000e+00> : vector<2x32xf32>
    %146 = tpu.matmul %141, %34, %cst_61 {dimension_numbers = #tpu.dot_dimension_numbers<[1], [0], [0], [1], [0, 0, 1, 1], [], []>} : vector<2x32xf32>, vector<32x32xf32>, vector<2x32xf32> -> vector<2x32xf32>
    %147 = vector.broadcast %40 : vector<1x32xf32> to vector<2x32xf32>
    %148 = arith.addf %146, %147 : vector<2x32xf32>
    %cst_62 = arith.constant dense<0.000000e+00> : vector<2x32xf32>
    %149 = tpu.matmul %141, %36, %cst_62 {dimension_numbers = #tpu.dot_dimension_numbers<[1], [0], [0], [1], [0, 0, 1, 1], [], []>} : vector<2x32xf32>, vector<32x32xf32>, vector<2x32xf32> -> vector<2x32xf32>
    %150 = vector.broadcast %42 : vector<1x32xf32> to vector<2x32xf32>
    %151 = arith.addf %149, %150 : vector<2x32xf32>
    %152 = vector.extract_strided_slice %16 {offsets = [6, 0], sizes = [2, 32], strides = [1, 1]} : vector<16x32xf32> to vector<2x32xf32>
    %153 = arith.addf %152, %145 : vector<2x32xf32>
    %154 = arith.negf %153 : vector<2x32xf32>
    %155 = math.exp %154 : vector<2x32xf32>
    %cst_63 = arith.constant 1.000000e+00 : f32
    %156 = vector.broadcast %cst_63 : f32 to vector<2x32xf32>
    %157 = arith.addf %156, %155 : vector<2x32xf32>
    %158 = arith.divf %156, %157 : vector<2x32xf32>
    %159 = vector.extract_strided_slice %23 {offsets = [6, 0], sizes = [2, 32], strides = [1, 1]} : vector<16x32xf32> to vector<2x32xf32>
    %160 = arith.addf %159, %148 : vector<2x32xf32>
    %161 = arith.negf %160 : vector<2x32xf32>
    %162 = math.exp %161 : vector<2x32xf32>
    %cst_64 = arith.constant 1.000000e+00 : f32
    %163 = vector.broadcast %cst_64 : f32 to vector<2x32xf32>
    %164 = arith.addf %163, %162 : vector<2x32xf32>
    %165 = arith.divf %163, %164 : vector<2x32xf32>
    %166 = vector.extract_strided_slice %30 {offsets = [6, 0], sizes = [2, 32], strides = [1, 1]} : vector<16x32xf32> to vector<2x32xf32>
    %167 = arith.mulf %158, %151 : vector<2x32xf32>
    %168 = arith.addf %166, %167 : vector<2x32xf32>
    %169 = math.tanh %168 : vector<2x32xf32>
    %cst_65 = arith.constant 1.000000e+00 : f32
    %170 = vector.broadcast %cst_65 : f32 to vector<2x32xf32>
    %171 = arith.subf %170, %165 : vector<2x32xf32>
    %172 = arith.mulf %171, %169 : vector<2x32xf32>
    %173 = arith.mulf %165, %141 : vector<2x32xf32>
    %174 = arith.addf %172, %173 : vector<2x32xf32>
    %175 = vector.extract_strided_slice %174 {offsets = [1, 0], sizes = [1, 32], strides = [1, 1]} : vector<2x32xf32> to vector<1x32xf32>
    %cst_66 = arith.constant dense<0.000000e+00> : vector<2x32xf32>
    %176 = tpu.matmul %174, %32, %cst_66 {dimension_numbers = #tpu.dot_dimension_numbers<[1], [0], [0], [1], [0, 0, 1, 1], [], []>} : vector<2x32xf32>, vector<32x32xf32>, vector<2x32xf32> -> vector<2x32xf32>
    %177 = vector.broadcast %38 : vector<1x32xf32> to vector<2x32xf32>
    %178 = arith.addf %176, %177 : vector<2x32xf32>
    %cst_67 = arith.constant dense<0.000000e+00> : vector<2x32xf32>
    %179 = tpu.matmul %174, %34, %cst_67 {dimension_numbers = #tpu.dot_dimension_numbers<[1], [0], [0], [1], [0, 0, 1, 1], [], []>} : vector<2x32xf32>, vector<32x32xf32>, vector<2x32xf32> -> vector<2x32xf32>
    %180 = vector.broadcast %40 : vector<1x32xf32> to vector<2x32xf32>
    %181 = arith.addf %179, %180 : vector<2x32xf32>
    %cst_68 = arith.constant dense<0.000000e+00> : vector<2x32xf32>
    %182 = tpu.matmul %174, %36, %cst_68 {dimension_numbers = #tpu.dot_dimension_numbers<[1], [0], [0], [1], [0, 0, 1, 1], [], []>} : vector<2x32xf32>, vector<32x32xf32>, vector<2x32xf32> -> vector<2x32xf32>
    %183 = vector.broadcast %42 : vector<1x32xf32> to vector<2x32xf32>
    %184 = arith.addf %182, %183 : vector<2x32xf32>
    %185 = vector.extract_strided_slice %16 {offsets = [8, 0], sizes = [2, 32], strides = [1, 1]} : vector<16x32xf32> to vector<2x32xf32>
    %186 = arith.addf %185, %178 : vector<2x32xf32>
    %187 = arith.negf %186 : vector<2x32xf32>
    %188 = math.exp %187 : vector<2x32xf32>
    %cst_69 = arith.constant 1.000000e+00 : f32
    %189 = vector.broadcast %cst_69 : f32 to vector<2x32xf32>
    %190 = arith.addf %189, %188 : vector<2x32xf32>
    %191 = arith.divf %189, %190 : vector<2x32xf32>
    %192 = vector.extract_strided_slice %23 {offsets = [8, 0], sizes = [2, 32], strides = [1, 1]} : vector<16x32xf32> to vector<2x32xf32>
    %193 = arith.addf %192, %181 : vector<2x32xf32>
    %194 = arith.negf %193 : vector<2x32xf32>
    %195 = math.exp %194 : vector<2x32xf32>
    %cst_70 = arith.constant 1.000000e+00 : f32
    %196 = vector.broadcast %cst_70 : f32 to vector<2x32xf32>
    %197 = arith.addf %196, %195 : vector<2x32xf32>
    %198 = arith.divf %196, %197 : vector<2x32xf32>
    %199 = vector.extract_strided_slice %30 {offsets = [8, 0], sizes = [2, 32], strides = [1, 1]} : vector<16x32xf32> to vector<2x32xf32>
    %200 = arith.mulf %191, %184 : vector<2x32xf32>
    %201 = arith.addf %199, %200 : vector<2x32xf32>
    %202 = math.tanh %201 : vector<2x32xf32>
    %cst_71 = arith.constant 1.000000e+00 : f32
    %203 = vector.broadcast %cst_71 : f32 to vector<2x32xf32>
    %204 = arith.subf %203, %198 : vector<2x32xf32>
    %205 = arith.mulf %204, %202 : vector<2x32xf32>
    %206 = arith.mulf %198, %174 : vector<2x32xf32>
    %207 = arith.addf %205, %206 : vector<2x32xf32>
    %208 = vector.extract_strided_slice %207 {offsets = [1, 0], sizes = [1, 32], strides = [1, 1]} : vector<2x32xf32> to vector<1x32xf32>
    %cst_72 = arith.constant dense<0.000000e+00> : vector<2x32xf32>
    %209 = tpu.matmul %207, %32, %cst_72 {dimension_numbers = #tpu.dot_dimension_numbers<[1], [0], [0], [1], [0, 0, 1, 1], [], []>} : vector<2x32xf32>, vector<32x32xf32>, vector<2x32xf32> -> vector<2x32xf32>
    %210 = vector.broadcast %38 : vector<1x32xf32> to vector<2x32xf32>
    %211 = arith.addf %209, %210 : vector<2x32xf32>
    %cst_73 = arith.constant dense<0.000000e+00> : vector<2x32xf32>
    %212 = tpu.matmul %207, %34, %cst_73 {dimension_numbers = #tpu.dot_dimension_numbers<[1], [0], [0], [1], [0, 0, 1, 1], [], []>} : vector<2x32xf32>, vector<32x32xf32>, vector<2x32xf32> -> vector<2x32xf32>
    %213 = vector.broadcast %40 : vector<1x32xf32> to vector<2x32xf32>
    %214 = arith.addf %212, %213 : vector<2x32xf32>
    %cst_74 = arith.constant dense<0.000000e+00> : vector<2x32xf32>
    %215 = tpu.matmul %207, %36, %cst_74 {dimension_numbers = #tpu.dot_dimension_numbers<[1], [0], [0], [1], [0, 0, 1, 1], [], []>} : vector<2x32xf32>, vector<32x32xf32>, vector<2x32xf32> -> vector<2x32xf32>
    %216 = vector.broadcast %42 : vector<1x32xf32> to vector<2x32xf32>
    %217 = arith.addf %215, %216 : vector<2x32xf32>
    %218 = vector.extract_strided_slice %16 {offsets = [10, 0], sizes = [2, 32], strides = [1, 1]} : vector<16x32xf32> to vector<2x32xf32>
    %219 = arith.addf %218, %211 : vector<2x32xf32>
    %220 = arith.negf %219 : vector<2x32xf32>
    %221 = math.exp %220 : vector<2x32xf32>
    %cst_75 = arith.constant 1.000000e+00 : f32
    %222 = vector.broadcast %cst_75 : f32 to vector<2x32xf32>
    %223 = arith.addf %222, %221 : vector<2x32xf32>
    %224 = arith.divf %222, %223 : vector<2x32xf32>
    %225 = vector.extract_strided_slice %23 {offsets = [10, 0], sizes = [2, 32], strides = [1, 1]} : vector<16x32xf32> to vector<2x32xf32>
    %226 = arith.addf %225, %214 : vector<2x32xf32>
    %227 = arith.negf %226 : vector<2x32xf32>
    %228 = math.exp %227 : vector<2x32xf32>
    %cst_76 = arith.constant 1.000000e+00 : f32
    %229 = vector.broadcast %cst_76 : f32 to vector<2x32xf32>
    %230 = arith.addf %229, %228 : vector<2x32xf32>
    %231 = arith.divf %229, %230 : vector<2x32xf32>
    %232 = vector.extract_strided_slice %30 {offsets = [10, 0], sizes = [2, 32], strides = [1, 1]} : vector<16x32xf32> to vector<2x32xf32>
    %233 = arith.mulf %224, %217 : vector<2x32xf32>
    %234 = arith.addf %232, %233 : vector<2x32xf32>
    %235 = math.tanh %234 : vector<2x32xf32>
    %cst_77 = arith.constant 1.000000e+00 : f32
    %236 = vector.broadcast %cst_77 : f32 to vector<2x32xf32>
    %237 = arith.subf %236, %231 : vector<2x32xf32>
    %238 = arith.mulf %237, %235 : vector<2x32xf32>
    %239 = arith.mulf %231, %207 : vector<2x32xf32>
    %240 = arith.addf %238, %239 : vector<2x32xf32>
    %241 = vector.extract_strided_slice %240 {offsets = [1, 0], sizes = [1, 32], strides = [1, 1]} : vector<2x32xf32> to vector<1x32xf32>
    %cst_78 = arith.constant dense<0.000000e+00> : vector<2x32xf32>
    %242 = tpu.matmul %240, %32, %cst_78 {dimension_numbers = #tpu.dot_dimension_numbers<[1], [0], [0], [1], [0, 0, 1, 1], [], []>} : vector<2x32xf32>, vector<32x32xf32>, vector<2x32xf32> -> vector<2x32xf32>
    %243 = vector.broadcast %38 : vector<1x32xf32> to vector<2x32xf32>
    %244 = arith.addf %242, %243 : vector<2x32xf32>
    %cst_79 = arith.constant dense<0.000000e+00> : vector<2x32xf32>
    %245 = tpu.matmul %240, %34, %cst_79 {dimension_numbers = #tpu.dot_dimension_numbers<[1], [0], [0], [1], [0, 0, 1, 1], [], []>} : vector<2x32xf32>, vector<32x32xf32>, vector<2x32xf32> -> vector<2x32xf32>
    %246 = vector.broadcast %40 : vector<1x32xf32> to vector<2x32xf32>
    %247 = arith.addf %245, %246 : vector<2x32xf32>
    %cst_80 = arith.constant dense<0.000000e+00> : vector<2x32xf32>
    %248 = tpu.matmul %240, %36, %cst_80 {dimension_numbers = #tpu.dot_dimension_numbers<[1], [0], [0], [1], [0, 0, 1, 1], [], []>} : vector<2x32xf32>, vector<32x32xf32>, vector<2x32xf32> -> vector<2x32xf32>
    %249 = vector.broadcast %42 : vector<1x32xf32> to vector<2x32xf32>
    %250 = arith.addf %248, %249 : vector<2x32xf32>
    %251 = vector.extract_strided_slice %16 {offsets = [12, 0], sizes = [2, 32], strides = [1, 1]} : vector<16x32xf32> to vector<2x32xf32>
    %252 = arith.addf %251, %244 : vector<2x32xf32>
    %253 = arith.negf %252 : vector<2x32xf32>
    %254 = math.exp %253 : vector<2x32xf32>
    %cst_81 = arith.constant 1.000000e+00 : f32
    %255 = vector.broadcast %cst_81 : f32 to vector<2x32xf32>
    %256 = arith.addf %255, %254 : vector<2x32xf32>
    %257 = arith.divf %255, %256 : vector<2x32xf32>
    %258 = vector.extract_strided_slice %23 {offsets = [12, 0], sizes = [2, 32], strides = [1, 1]} : vector<16x32xf32> to vector<2x32xf32>
    %259 = arith.addf %258, %247 : vector<2x32xf32>
    %260 = arith.negf %259 : vector<2x32xf32>
    %261 = math.exp %260 : vector<2x32xf32>
    %cst_82 = arith.constant 1.000000e+00 : f32
    %262 = vector.broadcast %cst_82 : f32 to vector<2x32xf32>
    %263 = arith.addf %262, %261 : vector<2x32xf32>
    %264 = arith.divf %262, %263 : vector<2x32xf32>
    %265 = vector.extract_strided_slice %30 {offsets = [12, 0], sizes = [2, 32], strides = [1, 1]} : vector<16x32xf32> to vector<2x32xf32>
    %266 = arith.mulf %257, %250 : vector<2x32xf32>
    %267 = arith.addf %265, %266 : vector<2x32xf32>
    %268 = math.tanh %267 : vector<2x32xf32>
    %cst_83 = arith.constant 1.000000e+00 : f32
    %269 = vector.broadcast %cst_83 : f32 to vector<2x32xf32>
    %270 = arith.subf %269, %264 : vector<2x32xf32>
    %271 = arith.mulf %270, %268 : vector<2x32xf32>
    %272 = arith.mulf %264, %240 : vector<2x32xf32>
    %273 = arith.addf %271, %272 : vector<2x32xf32>
    %274 = vector.extract_strided_slice %273 {offsets = [1, 0], sizes = [1, 32], strides = [1, 1]} : vector<2x32xf32> to vector<1x32xf32>
    %cst_84 = arith.constant dense<0.000000e+00> : vector<2x32xf32>
    %275 = tpu.matmul %273, %32, %cst_84 {dimension_numbers = #tpu.dot_dimension_numbers<[1], [0], [0], [1], [0, 0, 1, 1], [], []>} : vector<2x32xf32>, vector<32x32xf32>, vector<2x32xf32> -> vector<2x32xf32>
    %276 = vector.broadcast %38 : vector<1x32xf32> to vector<2x32xf32>
    %277 = arith.addf %275, %276 : vector<2x32xf32>
    %cst_85 = arith.constant dense<0.000000e+00> : vector<2x32xf32>
    %278 = tpu.matmul %273, %34, %cst_85 {dimension_numbers = #tpu.dot_dimension_numbers<[1], [0], [0], [1], [0, 0, 1, 1], [], []>} : vector<2x32xf32>, vector<32x32xf32>, vector<2x32xf32> -> vector<2x32xf32>
    %279 = vector.broadcast %40 : vector<1x32xf32> to vector<2x32xf32>
    %280 = arith.addf %278, %279 : vector<2x32xf32>
    %cst_86 = arith.constant dense<0.000000e+00> : vector<2x32xf32>
    %281 = tpu.matmul %273, %36, %cst_86 {dimension_numbers = #tpu.dot_dimension_numbers<[1], [0], [0], [1], [0, 0, 1, 1], [], []>} : vector<2x32xf32>, vector<32x32xf32>, vector<2x32xf32> -> vector<2x32xf32>
    %282 = vector.broadcast %42 : vector<1x32xf32> to vector<2x32xf32>
    %283 = arith.addf %281, %282 : vector<2x32xf32>
    %284 = vector.extract_strided_slice %16 {offsets = [14, 0], sizes = [2, 32], strides = [1, 1]} : vector<16x32xf32> to vector<2x32xf32>
    %285 = arith.addf %284, %277 : vector<2x32xf32>
    %286 = arith.negf %285 : vector<2x32xf32>
    %287 = math.exp %286 : vector<2x32xf32>
    %cst_87 = arith.constant 1.000000e+00 : f32
    %288 = vector.broadcast %cst_87 : f32 to vector<2x32xf32>
    %289 = arith.addf %288, %287 : vector<2x32xf32>
    %290 = arith.divf %288, %289 : vector<2x32xf32>
    %291 = vector.extract_strided_slice %23 {offsets = [14, 0], sizes = [2, 32], strides = [1, 1]} : vector<16x32xf32> to vector<2x32xf32>
    %292 = arith.addf %291, %280 : vector<2x32xf32>
    %293 = arith.negf %292 : vector<2x32xf32>
    %294 = math.exp %293 : vector<2x32xf32>
    %cst_88 = arith.constant 1.000000e+00 : f32
    %295 = vector.broadcast %cst_88 : f32 to vector<2x32xf32>
    %296 = arith.addf %295, %294 : vector<2x32xf32>
    %297 = arith.divf %295, %296 : vector<2x32xf32>
    %298 = vector.extract_strided_slice %30 {offsets = [14, 0], sizes = [2, 32], strides = [1, 1]} : vector<16x32xf32> to vector<2x32xf32>
    %299 = arith.mulf %290, %283 : vector<2x32xf32>
    %300 = arith.addf %298, %299 : vector<2x32xf32>
    %301 = math.tanh %300 : vector<2x32xf32>
    %cst_89 = arith.constant 1.000000e+00 : f32
    %302 = vector.broadcast %cst_89 : f32 to vector<2x32xf32>
    %303 = arith.subf %302, %297 : vector<2x32xf32>
    %304 = arith.mulf %303, %301 : vector<2x32xf32>
    %305 = arith.mulf %297, %273 : vector<2x32xf32>
    %306 = arith.addf %304, %305 : vector<2x32xf32>
    %307 = vector.extract_strided_slice %306 {offsets = [1, 0], sizes = [1, 32], strides = [1, 1]} : vector<2x32xf32> to vector<1x32xf32>
    %c0_90 = arith.constant 0 : index
    %c0_91 = arith.constant 0 : index
    %308 = vector.load %arg10[%c0_90, %c0_91] : memref<2x32xf32, #tpu.memory_space<vmem>>, vector<2x32xf32>
    tpu.vector_store %arg10[%c0_90, %c0_91], %306 {strides = array<i32>} : memref<2x32xf32, #tpu.memory_space<vmem>>, vector<2x32xf32>,
    %309 = tpu.concatenate %76, %109, %142, %175, %208, %241, %274, %307 in 0 : vector<1x32xf32>, vector<1x32xf32>, vector<1x32xf32>, vector<1x32xf32>, vector<1x32xf32>, vector<1x32xf32>, vector<1x32xf32>, vector<1x32xf32> -> vector<8x32xf32>
    %c0_92 = arith.constant 0 : index
    %c0_93 = arith.constant 0 : index
    %310 = vector.load %arg7[%c0_92, %c0_93] : memref<32x128xf32, #tpu.memory_space<vmem>>, vector<32x128xf32>
    %cst_94 = arith.constant dense<0.000000e+00> : vector<8x128xf32>
    %311 = tpu.matmul %309, %310, %cst_94 {dimension_numbers = #tpu.dot_dimension_numbers<[1], [0], [0], [1], [0, 0, 1, 1], [], []>} : vector<8x32xf32>, vector<32x128xf32>, vector<8x128xf32> -> vector<8x128xf32>
    %c0_95 = arith.constant 0 : index
    %c0_96 = arith.constant 0 : index
    %312 = vector.load %arg8[%c0_95, %c0_96] : memref<1x128xf32, #tpu.memory_space<vmem>>, vector<1x128xf32>
    %313 = vector.broadcast %312 : vector<1x128xf32> to vector<8x128xf32>
    %314 = arith.addf %311, %313 : vector<8x128xf32>
    %c0_97 = arith.constant 0 : index
    %c0_98 = arith.constant 0 : index
    %315 = vector.load %arg9[%c0_97, %c0_98] : memref<8x128xf32, #tpu.memory_space<vmem>>, vector<8x128xf32>
    tpu.vector_store %arg9[%c0_97, %c0_98], %314 {strides = array<i32>} : memref<8x128xf32, #tpu.memory_space<vmem>>, vector<8x128xf32>,
    return
  }
}

</mosaic_0001>

<bundles_post_ra>
// kernel: tpu_custom_call.1
= control target key start
LH: loop header
LB: loop body
LE: loop exit
PB: predicated region body
PF: predicated region fallthrough
CT: control target
= control target key end

     0   :  { %16 = vsyncpa [#allocation3], 0  ;;  %s2139_s0 = inlined_call_operand.vmem [shape: s32[8,2], index: 0, kind: input, shape index: {}]   ;;  %s2140_s1 = inlined_call_operand.hbm [shape: f32[20,32], index: 1, kind: input, shape index: {}]   ;;  %s2141_s2 = inlined_call_operand.vmem [shape: f32[2,32], index: 2, kind: input, shape index: {}]   ;;  %s2142_s3 = inlined_call_operand.hbm [shape: f32[3,32,32], index: 3, kind: input, shape index: {}]   ;;  %s2143_s4 = inlined_call_operand.hbm [shape: f32[3,32,32], index: 4, kind: input, shape index: {}]   ;;  %s2144_s5 = inlined_call_operand.vmem [shape: f32[3,1,32], index: 5, kind: input, shape index: {}]   ;;  %s2145_s6 = inlined_call_operand.vmem [shape: f32[3,1,32], index: 6, kind: input, shape index: {}]   ;;  %s2146_s7 = inlined_call_operand.hbm [shape: f32[32,128], index: 7, kind: input, shape index: {}]   ;;  %s2147_s8 = inlined_call_operand.vmem [shape: f32[1,128], index: 8, kind: input, shape index: {}]   ;;  %s2148_s9 = inlined_call_operand.hbm [shape: f32[8,128], index: 9, kind: output, shape index: {0}]   ;;  %s2149_s10 = inlined_call_operand.hbm [shape: f32[2,32], index: 10, kind: output, shape index: {1}]  }
   0x1   :  { %17 = vsyncpa [#allocation6], 0 }
   0x2   :  { %18 = vsyncpa [#allocation9], 0 }
   0x3   :  { %19 = vsyncpa [#allocation4], 0 }
   0x4   :  { %20 = vsyncpa [#allocation12], 0  ;;  %s42_s15 = sshll.u32 %s2142_s3, 4  ;;  %s1735_s16 = smov [#allocation5]   ;;  %s43_s15 = int_to_ptr.hbm [resolvable:$true] %s42_s15 }
   0x5   :  { %s44_s17 = sshll.u32 %s1735_s16, 4  ;;  %s27_s20 = sshll.u32 %s2140_s1, 4  ;;  %s45_s17 = int_to_ptr.vmem [resolvable:$true] %s44_s17  ;;  %s28_s20 = int_to_ptr.hbm [resolvable:$true] %s27_s20 }
   0x6   :  { %s1736_s21 = smov 128   ;;  %s1737_s22 = smov 8  }
   0x7   :  { %50 = dma.hbm_to_vmem [thread:$0]  %s43_s15, 1536, %s45_s17, [#allocation6], %s1736_s21, %s1736_s21, %s1737_s22  }
   0x8   :  { %s1738_s23 = smov [#allocation2]   ;;  %s55_s27 = sshll.u32 %s2143_s4, 4  ;;  %s56_s27 = int_to_ptr.hbm [resolvable:$true] %s55_s27 }
   0x9   :  { %s29_s24 = sshll.u32 %s1738_s23, 4  ;;  %s72_s29 = sshll.u32 %s2146_s7, 4  ;;  %s30_s24 = int_to_ptr.vmem [resolvable:$true] %s29_s24  ;;  %s73_s29 = int_to_ptr.hbm [resolvable:$true] %s72_s29 }
   0xa   :  { %35 = dma.hbm_to_vmem [thread:$0]  %s28_s20, 384, %s30_s24, [#allocation3], %s1736_s21, %s1736_s21, %s1737_s22  }
   0xb   :  { %s1739_s30 = smov [#allocation7]   ;;  %s1740_s1 = smov [#allocation8]  }
   0xc   :  { %s57_s11 = sshll.u32 %s1739_s30, 4  ;;  %s74_s12 = sshll.u32 %s1740_s1, 4  ;;  %s58_s11 = int_to_ptr.vmem [resolvable:$true] %s57_s11  ;;  %s75_s12 = int_to_ptr.vmem [resolvable:$true] %s74_s12 }
   0xd   :  { %63 = dma.hbm_to_vmem [thread:$0]  %s56_s27, 1536, %s58_s11, [#allocation6], %s1736_s21, %s1736_s21, %s1737_s22  }
   0xe   :  { %80 = dma.hbm_to_vmem [thread:$0]  %s73_s29, 512, %s75_s12, [#allocation9], %s1736_s21, %s1736_s21, %s1737_s22  }
   0xf   :  { %1725 = dma.done.wait [#allocation3], 384  }
  0x10   :  { %1726 = vsyncadd [#allocation3], 4294966912 }
  0x11   :  { %1727 = dma.done.wait [#allocation6], 3072  }
  0x12   :  { %1728 = vsyncadd [#allocation6], 4294964224 }
  0x13   :  { %1729 = dma.done.wait [#allocation9], 512  }
  0x14   :  { %1730 = vsyncadd [#allocation9], 4294966784  ;;  %v100_v0 = vlaneseq  ;;  %v99_v2 = vld [vmem:[%s2139_s0] sm:$0xff]  ;;  %v1741_v13 = vmov 0.0   ;;  %v184_v15 = vld [vmem:[#allocation2 + $0x10] sm:$0xf] }
  0x15   :  { %v116_v3 = vperm.slane %v99_v2, 2  ;;  %v102_v4 = vperm.slane %v99_v2, 0  ;;  %v130_v5 = vperm.slane %v99_v2, 4  ;;  %v123_v6 = vperm.slane %v99_v2, 3  ;;  %v183_v16 = vld [vmem:[#allocation2 + $0x8] sm:$0xff]  ;;  %v182_v18 = vld [vmem:[#allocation2] sm:$0xff] }
  0x16   :  { %v104_v1 = vshrl.u32 %v100_v0, 7  ;;  %v109_v7 = vperm.slane %v99_v2, 1  ;;  %v137_v8 = vperm.slane %v99_v2, 5  ;;  %v151_v9 = vperm.slane %v99_v2, 7  ;;  %v1819_v20 = vld [vmem:[#allocation7 + $0x18] sm:$0xff]  ;;  %v244_v24 = vld [vmem:[#allocation5 + $0x10] sm:$0xff] }
  0x17   :  { %v144_v10 = vperm.slane %v99_v2, 6  ;;  %v1814_v11 = vand.u32 127, %v100_v0  ;;  %vm215_vm1 = vcmask 1043456   ;;  %v245_v21 = vld [vmem:[#allocation5 + $0x18] sm:$0xff]  ;;  %v283_v25 = vld [vmem:[#allocation5 + $0x30] sm:$0xff]  ;;  %v243_v28 = vld [vmem:[#allocation5 + $0x8] sm:$0xff] }
  0x18   :  { %1492 = vset.pattern.permute.xlu1 %v104_v1  ;;  %1491 = vset.pattern.permute.xlu0 %v104_v1  ;;  %v284_v22 = vld [vmem:[#allocation5 + $0x38] sm:$0xff]  ;;  %v316_v26 = vld [vmem:[#allocation5 + $0x50] sm:$0xff]  ;;  %v282_v29 = vld [vmem:[#allocation5 + $0x28] sm:$0xff]  ;;  %vm210_vm9 = vcmask 162816   ;;  %vm250_vm10 = vcmask 261120   ;;  %s1403_s27 = sshll.u32 %s2149_s10, 4  ;;  %s1404_s27 = int_to_ptr.hbm [resolvable:$true] %s1403_s27 }
  0x19   :  { %1493 = vset.pattern.permute.xlu2 %v104_v1  ;;  %1428 = vmatpush.msk.msra.mxu0 %vm215_vm1, %v184_v15  ;;  %v317_v23 = vld [vmem:[#allocation5 + $0x58] sm:$0xff]  ;;  %v1822_v27 = vld [vmem:[#allocation7 + $0x10] sm:$0xff]  ;;  %v315_v30 = vld [vmem:[#allocation5 + $0x48] sm:$0xff]  ;;  %s1743_s29 = smov [#allocation10]   ;;  %s1392_s12 = sshll.u32 %s2148_s9, 4  ;;  %s1393_s12 = int_to_ptr.hbm [resolvable:$true] %s1392_s12 }
  0x1a   :  { %269 = vmatpush.msra.mxu1 %v245_v21  ;;  %302 = vmatpush.msra.mxu2 %v284_v22  ;;  %v1825_v31 = vld [vmem:[#allocation7 + $0x8] sm:$0xff]  ;;  %v242_v46 = vld [vmem:[#allocation5] sm:$0xff]  ;;  %v1844_v51 = vld [vmem:[#allocation7 + $0x38] sm:$0xff]  ;;  %s1390_s30 = sshll.u32 %s1743_s29, 4  ;;  %s1391_s30 = int_to_ptr.vmem [resolvable:$true] %s1390_s30 }
  0x1b   :  { %233 = vmatpush.msra.mxu0 %v183_v16  ;;  %335 = vmatpush.msra.mxu3 %v317_v23  ;;  %v281_v47 = vld [vmem:[#allocation5 + $0x20] sm:$0xff]  ;;  %v1846_v52 = vld [vmem:[#allocation7 + $0x30] sm:$0xff]  ;;  %v1856_v53 = vld [vmem:[#allocation7 + $0x28] sm:$0xff] }
  0x1c   :  { %270 = vmatpush.msra.mxu1 %v244_v24  ;;  %303 = vmatpush.msra.mxu2 %v283_v25  ;;  %v314_v48 = vld [vmem:[#allocation5 + $0x40] sm:$0xff]  ;;  %v1860_v55 = vld [vmem:[#allocation7 + $0x58] sm:$0xff]  ;;  %v1868_v56 = vld [vmem:[#allocation7 + $0x50] sm:$0xff] }
  0x1d   :  { %234 = vmatpush.msra.mxu0 %v182_v18  ;;  %336 = vmatpush.msra.mxu3 %v316_v26  ;;  %v1834_v49 = vld [vmem:[#allocation7] sm:$0xff]  ;;  %v1870_v57 = vld [vmem:[#allocation7 + $0x48] sm:$0xff] }
  0x1e   :  { %271 = vmatpush.msra.mxu1 %v243_v28  ;;  %304 = vmatpush.msra.mxu2 %v282_v29  ;;  %v1840_v50 = vld [vmem:[%s2141_s2] sm:$0x3]  ;;  %v1941_v25 = vld [vmem:[%s2145_s6 + $0x2] ss:$0 sm:$0xff] }
  0x1f   :  { %384 = vmatpush.msrb.mxu0 %v1819_v20  ;;  %337 = vmatpush.msra.mxu3 %v315_v30  ;;  %v1858_v54 = vld [vmem:[#allocation7 + $0x20] sm:$0xff] }
  0x20   :  { %121 = vperm.xlu1 %1492, %v116_v3   ;;  %107 = vperm.xlu0 %1491, %v102_v4   ;;  %v1874_v58 = vld [vmem:[#allocation7 + $0x40] sm:$0xff] }
  0x21   :  { %135 = vperm.xlu2 %1493, %v130_v5   ;;  %385 = vmatpush.msrb.mxu0 %v1822_v27  ;;  %v1913_v61 = vld [vmem:[%s2145_s6] ss:$0 sm:$0xff] }
  0x22   :  { %272 = vmatpush.msra.mxu1 %v242_v46  ;;  %305 = vmatpush.msra.mxu2 %v281_v47  ;;  %v1494_v63 = vld [vmem:[%s2144_s5] ss:$0 sm:$0xff] }
  0x23   :  { %386 = vmatpush.msrb.mxu0 %v1825_v31  ;;  %338 = vmatpush.msra.mxu3 %v314_v48 }
  0x24   :  { %407 = vmatpush.msrb.mxu1 %v1844_v51  ;;  %430 = vmatpush.msrb.mxu2 %v1860_v55 }
  0x25   :  { %387 = vmatpush.msrb.mxu0 %v1834_v49  ;;  %500 = vmatpush.msrb.mxu3 %v1819_v20 }
  0x26   :  { %408 = vmatpush.msrb.mxu1 %v1846_v52  ;;  %431 = vmatpush.msrb.mxu2 %v1868_v56 }
  0x27   :  { %501 = vmatpush.msrb.mxu3 %v1822_v27 }
  0x28   :  { %128 = vperm.xlu1 %1492, %v123_v6   ;;  %114 = vperm.xlu0 %1491, %v109_v7  }
  0x29   :  { %142 = vperm.xlu2 %1493, %v137_v8   ;;  %502 = vmatpush.msrb.mxu3 %v1825_v31 }
  0x2a   :  { %409 = vmatpush.msrb.mxu1 %v1856_v53  ;;  %432 = vmatpush.msrb.mxu2 %v1870_v57 }
  0x2b   :  { %503 = vmatpush.msrb.mxu3 %v1834_v49 }
  0x2c   :  { %410 = vmatpush.msrb.mxu1 %v1858_v54  ;;  %433 = vmatpush.msrb.mxu2 %v1874_v58 }
  0x30   :  { %156 = vperm.xlu1 %1492, %v151_v9   ;;  %149 = vperm.xlu0 %1491, %v144_v10   ;;  %v1496_v9 = vld [vmem:[%s2144_s5 + $0x1] ss:$0 sm:$0xff] }
  0x31   :  { %v1930_v10 = vld [vmem:[%s2145_s6 + $0x1] ss:$0 sm:$0xff] }
  0x7b   :  { %v136_v12 = vpop.permute.xlu2 %135 }
  0x7c   :  { %vm162_vm0 = vcmp.eq.s32.totalorder %v1814_v11, %v136_v12 }
  0x7d   :  { %v1424_v14 = vsel %vm162_vm0, 1.0, %v1741_v13 }
  0x7e   :  { %201 = vst [vmem:[#allocation1 + $0x20] ss:$4 sm:$0xff] %v1424_v14 }
  0x83   :  { %v143_v17 = vpop.permute.xlu2 %142 }
  0x84   :  { %vm163_vm2 = vcmp.eq.s32.totalorder %v1814_v11, %v143_v17 }
  0x85   :  { %v1425_v19 = vsel %vm163_vm2, 1.0, %v1741_v13 }
  0x86   :  { %203 = vst [vmem:[#allocation1 + $0x21] ss:$4 sm:$0xff] %v1425_v19 }
  0x92   :  { %v122_v32 = vpop.permute.xlu1 %121  ;;  %v108_v33 = vpop.permute.xlu0 %107 }
  0x93   :  { %vm160_vm3 = vcmp.eq.s32.totalorder %v1814_v11, %v122_v32  ;;  %vm158_vm4 = vcmp.eq.s32.totalorder %v1814_v11, %v108_v33 }
  0x94   :  { %v1422_v34 = vsel %vm160_vm3, 1.0, %v1741_v13  ;;  %v1420_v35 = vsel %vm158_vm4, 1.0, %v1741_v13 }
  0x95   :  { %197 = vst [vmem:[#allocation1 + $0x2] ss:$4 sm:$0xff] %v1422_v34 }
  0x96   :  { %193 = vst [vmem:[#allocation1] ss:$4 sm:$0xff] %v1420_v35 }
  0x9a   :  { %v129_v36 = vpop.permute.xlu1 %128  ;;  %v115_v37 = vpop.permute.xlu0 %114 }
  0x9b   :  { %vm161_vm5 = vcmp.eq.s32.totalorder %v1814_v11, %v129_v36  ;;  %vm159_vm6 = vcmp.eq.s32.totalorder %v1814_v11, %v115_v37  ;;  %v1947_v37 = vld [vmem:[%s2144_s5 + $0x2] ss:$0 sm:$0xff]  ;;  %s1742_s5 = smov [#allocation11]  }
  0x9c   :  { %v1423_v38 = vsel %vm161_vm5, 1.0, %v1741_v13  ;;  %v1421_v39 = vsel %vm159_vm6, 1.0, %v1741_v13  ;;  %s1401_s6 = sshll.u32 %s1742_s5, 4  ;;  %s1402_s6 = int_to_ptr.vmem [resolvable:$true] %s1401_s6 }
  0x9d   :  { %199 = vst [vmem:[#allocation1 + $0x3] ss:$4 sm:$0xff] %v1423_v38 }
  0x9e   :  { %195 = vst [vmem:[#allocation1 + $0x1] ss:$4 sm:$0xff] %v1421_v39 }
  0xa2   :  { %v157_v40 = vpop.permute.xlu1 %156  ;;  %v150_v41 = vpop.permute.xlu0 %149 }
  0xa3   :  { %vm165_vm7 = vcmp.eq.s32.totalorder %v1814_v11, %v157_v40  ;;  %vm164_vm8 = vcmp.eq.s32.totalorder %v1814_v11, %v150_v41 }
  0xa4   :  { %v1427_v42 = vsel %vm165_vm7, 1.0, %v1741_v13  ;;  %v1426_v43 = vsel %vm164_vm8, 1.0, %v1741_v13 }
  0xa5   :  { %207 = vst [vmem:[#allocation1 + $0x23] ss:$4 sm:$0xff] %v1427_v42  ;;  %v208_v44 = vld.sshfl [vmem:[#allocation1] sm:$0xff pattern:$0x73625140] }
  0xa6   :  { %205 = vst [vmem:[#allocation1 + $0x22] ss:$4 sm:$0xff] %v1426_v43  ;;  %1429 = vmatmul.msk.f32.vlgmr.msra.gmra.mxu0 %vm210_vm9, %v208_v44 }
  0xa7   :  { %520 = vmatpush.msra.mxu0 %v1844_v51 }
  0xa9   :  { %521 = vmatpush.msra.mxu0 %v1846_v52 }
  0xab   :  { %522 = vmatpush.msra.mxu0 %v1856_v53 }
  0xad   :  { %v209_v45 = vld.sshfl [vmem:[#allocation1 + $0x20] sm:$0xff pattern:$0x73625140]  ;;  %523 = vmatpush.msra.mxu0 %v1858_v54 }
  0xae   :  { %1430 = vmatmul.msk.f32.gmra.mxu0 %vm210_vm9, %v209_v45 }
  0xb6   :  { %1441 = vmatmul.msk.f32.vlgmr.msrb.gmra.mxu0 %vm250_vm10, %v1840_v50 }
  0xb7   :  { %662 = vmatpush.msrb.mxu0 %v1860_v55 }
  0xb9   :  { %663 = vmatpush.msrb.mxu0 %v1868_v56 }
  0xbb   :  { %664 = vmatpush.msrb.mxu0 %v1870_v57 }
  0xbd   :  { %665 = vmatpush.msrb.mxu0 %v1874_v58 }
 0x123   :  { %v236_v59 = vpop.f32.mrf.mxu0 }
 0x124   :  { %1431 = vmatmul.msk.f32.vlgmr.msra.gmra.mxu1 %vm250_vm10, %v236_v59  ;;  %1434 = vmatmul.msk.f32.vlgmr.msra.gmra.mxu2 %vm250_vm10, %v236_v59 }
 0x125   :  { %1437 = vmatmul.msk.f32.vlgmr.msra.gmra.mxu3 %vm250_vm10, %v236_v59  ;;  %540 = vmatpush.msra.mxu1 %v1860_v55 }
 0x126   :  { %622 = vmatpush.msra.mxu2 %v1819_v20  ;;  %642 = vmatpush.msra.mxu3 %v1844_v51 }
 0x127   :  { %541 = vmatpush.msra.mxu1 %v1868_v56 }
 0x128   :  { %623 = vmatpush.msra.mxu2 %v1822_v27  ;;  %643 = vmatpush.msra.mxu3 %v1846_v52 }
 0x129   :  { %542 = vmatpush.msra.mxu1 %v1870_v57 }
 0x12a   :  { %624 = vmatpush.msra.mxu2 %v1825_v31  ;;  %644 = vmatpush.msra.mxu3 %v1856_v53 }
 0x12b   :  { %v239_v60 = vpop.f32.mrf.mxu0  ;;  %543 = vmatpush.msra.mxu1 %v1874_v58 }
 0x12c   :  { %1432 = vmatmul.msk.f32.gmra.mxu1 %vm250_vm10, %v239_v60  ;;  %1435 = vmatmul.msk.f32.gmra.mxu2 %vm250_vm10, %v239_v60 }
 0x12d   :  { %1438 = vmatmul.msk.f32.gmra.mxu3 %vm250_vm10, %v239_v60  ;;  %625 = vmatpush.msra.mxu2 %v1834_v49 }
 0x12e   :  { %645 = vmatpush.msra.mxu3 %v1858_v54 }
 0x133   :  { %v389_v62 = vpop.f32.mrf.mxu0 }
 0x134   :  { %1442 = vmatmul.msk.f32.vlgmr.msrb.gmra.mxu1 %vm250_vm10, %v1840_v50  ;;  %1443 = vmatmul.msk.f32.vlgmr.msrb.gmra.mxu2 %vm250_vm10, %v1840_v50  ;;  %v390_v0 = vadd.f32 %v1913_v61, %v389_v62 }
 0x135   :  { %744 = vmatpush.msrb.mxu1 %v1819_v20  ;;  %764 = vmatpush.msrb.mxu2 %v1844_v51 }
 0x137   :  { %745 = vmatpush.msrb.mxu1 %v1822_v27  ;;  %765 = vmatpush.msrb.mxu2 %v1846_v52 }
 0x139   :  { %746 = vmatpush.msrb.mxu1 %v1825_v31  ;;  %766 = vmatpush.msrb.mxu2 %v1856_v53 }
 0x13b   :  { %747 = vmatpush.msrb.mxu1 %v1834_v49  ;;  %767 = vmatpush.msrb.mxu2 %v1858_v54 }
 0x1a1   :  { %v274_v1 = vpop.f32.mrf.mxu1 }
 0x1a2   :  { %v1919_v2 = vadd.f32 %v1494_v63, %v274_v1 }
 0x1a4   :  { %v438_v3 = vadd.f32 %v390_v0, %v1919_v2 }
 0x1a6   :  { %v1444_v4 = vmul.f32 -1.442695, %v438_v3 }
 0x1a7   :  { %v307_v5 = vpop.f32.mrf.mxu2 }
 0x1a8   :  { %1501 = vpow2.f32 %v1444_v4  ;;  %v1934_v15 = vadd.f32 %v1496_v9, %v307_v5  ;;  %v340_v38 = vpop.f32.mrf.mxu3 }
 0x1a9   :  { %v277_v6 = vpop.f32.mrf.mxu1  ;;  %v1950_v41 = vadd.f32 %v1947_v37, %v340_v38 }
 0x1aa   :  { %v1922_v7 = vadd.f32 %v1494_v63, %v277_v6 }
 0x1ae   :  { %v1502_v8 = vpop.eup %1501 }
 0x1af   :  { %v442_v11 = vadd.f32 1.0, %v1502_v8  ;;  %v310_v12 = vpop.f32.mrf.mxu2 }
 0x1b0   :  { %v1932_v13 = vadd.f32 %v1496_v9, %v310_v12 }
 0x1b1   :  { %1503 = vrcp.f32 %v442_v11  ;;  %v412_v14 = vpop.f32.mrf.mxu1  ;;  %v454_v24 = vand.u32 2147483648, %v442_v11  ;;  %v452_v26 = vand.u32 2147483647, %v442_v11  ;;  %vm448_vm12 = vweird.f32 %v442_v11 }
 0x1b2   :  { %v413_v16 = vadd.f32 %v1930_v10, %v412_v14 }
 0x1b3   :  { %v455_v34 = vor.u32 1.1754944e-38, %v454_v24  ;;  %vm453_vm14 = vcmp.eq.f32.partialorder %v452_v26, 8.507059e+37 }
 0x1b4   :  { %v458_v17 = vadd.f32 %v413_v16, %v1934_v15 }
 0x1b6   :  { %v1445_v18 = vmul.f32 -1.442695, %v458_v17 }
 0x1b7   :  { %v1504_v19 = vpop.eup %1503  ;;  %v435_v29 = vpop.f32.mrf.mxu2 }
 0x1b8   :  { %1505 = vpow2.f32 %v1445_v18  ;;  %v444_v21 = vmul.f32 %v1504_v19, %v442_v11  ;;  %vm449_vm11 = vweird.f32 %v1504_v19  ;;  %v436_v35 = vadd.f32 %v1941_v25, %v435_v29 }
 0x1b9   :  { %vm450_vm13 = vmor %vm448_vm12, %vm449_vm11 }
 0x1ba   :  { %v445_v22 = vsub.f32 1.0, %v444_v21 }
 0x1bc   :  { %v446_v23 = vmul.f32 %v1504_v19, %v445_v22 }
 0x1be   :  { %v1506_v28 = vpop.eup %1505  ;;  %v447_v30 = vadd.f32 %v1504_v19, %v446_v23 }
 0x1bf   :  { %v462_v32 = vadd.f32 1.0, %v1506_v28 }
 0x1c0   :  { %v451_v33 = vsel %vm450_vm13, %v1504_v19, %v447_v30  ;;  %vm1340_vm13 = vcmask 1040384  }
 0x1c1   :  { %1507 = vrcp.f32 %v462_v32  ;;  %v456_v36 = vsel %vm453_vm14, %v455_v34, %v451_v33  ;;  %v474_v45 = vand.u32 2147483648, %v462_v32  ;;  %v472_v47 = vand.u32 2147483647, %v462_v32 }
 0x1c2   :  { %v478_v39 = vmul.f32 %v456_v36, %v436_v35  ;;  %vm468_vm0 = vweird.f32 %v462_v32 }
 0x1c3   :  { %v475_v59 = vor.u32 1.1754944e-38, %v474_v45  ;;  %vm473_vm3 = vcmp.eq.f32.partialorder %v472_v47, 8.507059e+37 }
 0x1c4   :  { %v479_v43 = vadd.f32 %v478_v39, %v1950_v41 }
 0x1c6   :  { %1509 = vtanh.f32 %v479_v43 }
 0x1c7   :  { %v1508_v40 = vpop.eup %1507 }
 0x1c8   :  { %v464_v42 = vmul.f32 %v1508_v40, %v462_v32  ;;  %vm469_vm15 = vweird.f32 %v1508_v40 }
 0x1c9   :  { %vm470_vm2 = vmor %vm468_vm0, %vm469_vm15 }
 0x1ca   :  { %v465_v44 = vsub.f32 1.0, %v464_v42 }
 0x1cc   :  { %v466_v46 = vmul.f32 %v1508_v40, %v465_v44  ;;  %v1510_v0 = vpop.eup %1509 }
 0x1ce   :  { %v467_v48 = vadd.f32 %v1508_v40, %v466_v46 }
 0x1d0   :  { %v471_v60 = vsel %vm470_vm2, %v1508_v40, %v467_v48 }
 0x1d1   :  { %v476_v62 = vsel %vm473_vm3, %v475_v59, %v471_v60 }
 0x1d2   :  { %v481_v63 = vsub.f32 1.0, %v476_v62  ;;  %v483_v3 = vmul.f32 %v476_v62, %v1840_v50  ;;  %v1974_v50 = vpop.f32.mrf.mxu3 }
 0x1d4   :  { %v482_v1 = vmul.f32 %v1510_v0, %v481_v63 }
 0x1d6   :  { %v1954_v4 = vadd.f32 %v483_v3, %v482_v1 }
 0x1d8   :  { %1446 = vmatmul.msk.f32.vlgmr.msrb.gmra.mxu3 %vm250_vm10, %v1954_v4  ;;  %1447 = vmatmul.msk.f32.vlgmr.msra.gmra.mxu0 %vm250_vm10, %v1954_v4  ;;  %v602_v3 = vrot.slane %v1954_v4, 6 }
 0x1d9   :  { %1448 = vmatmul.msk.f32.vlgmr.msra.gmra.mxu1 %vm250_vm10, %v1954_v4  ;;  %784 = vmatpush.msrb.mxu3 %v1860_v55 }
 0x1da   :  { %866 = vmatpush.msra.mxu0 %v1819_v20  ;;  %886 = vmatpush.msra.mxu1 %v1844_v51 }
 0x1db   :  { %785 = vmatpush.msrb.mxu3 %v1868_v56 }
 0x1dc   :  { %867 = vmatpush.msra.mxu0 %v1822_v27  ;;  %887 = vmatpush.msra.mxu1 %v1846_v52 }
 0x1dd   :  { %786 = vmatpush.msrb.mxu3 %v1870_v57 }
 0x1de   :  { %868 = vmatpush.msra.mxu0 %v1825_v31  ;;  %888 = vmatpush.msra.mxu1 %v1856_v53 }
 0x1df   :  { %787 = vmatpush.msrb.mxu3 %v1874_v58 }
 0x1e0   :  { %869 = vmatpush.msra.mxu0 %v1834_v49  ;;  %889 = vmatpush.msra.mxu1 %v1858_v54 }
 0x255   :  { %v525_v5 = vpop.f32.mrf.mxu0 }
 0x256   :  { %v526_v6 = vadd.f32 %v1930_v10, %v525_v5  ;;  %v545_v32 = vpop.f32.mrf.mxu1 }
 0x257   :  { %v546_v35 = vadd.f32 %v1941_v25, %v545_v32 }
 0x258   :  { %v572_v8 = vrot.slane %v526_v6, 6 }
 0x259   :  { %v595_v43 = vrot.slane %v546_v35, 6 }
 0x25a   :  { %v574_v9 = vadd.f32 %v572_v8, %v1934_v15 }
 0x25b   :  { %v505_v11 = vpop.f32.mrf.mxu3 }
 0x25c   :  { %v1450_v12 = vmul.f32 -1.442695, %v574_v9  ;;  %v506_v14 = vadd.f32 %v1913_v61, %v505_v11 }
 0x25e   :  { %1511 = vpow2.f32 %v1450_v12  ;;  %v549_v16 = vrot.slane %v506_v14, 6  ;;  %v1329_v12 = vrot.slane %v1954_v4, 1 }
 0x260   :  { %v551_v17 = vadd.f32 %v549_v16, %v1919_v2 }
 0x262   :  { %v1449_v18 = vmul.f32 -1.442695, %v551_v17 }
 0x264   :  { %v1512_v19 = vpop.eup %1511  ;;  %1513 = vpow2.f32 %v1449_v18 }
 0x265   :  { %v578_v21 = vadd.f32 1.0, %v1512_v19 }
 0x267   :  { %1515 = vrcp.f32 %v578_v21  ;;  %v590_v47 = vand.u32 2147483648, %v578_v21  ;;  %vm584_vm9 = vweird.f32 %v578_v21  ;;  %v588_v59 = vand.u32 2147483647, %v578_v21 }
 0x269   :  { %v591_v63 = vor.u32 1.1754944e-38, %v590_v47  ;;  %vm589_vm12 = vcmp.eq.f32.partialorder %v588_v59, 8.507059e+37 }
 0x26a   :  { %v1514_v22 = vpop.eup %1513 }
 0x26b   :  { %v555_v23 = vadd.f32 1.0, %v1514_v22 }
 0x26d   :  { %1517 = vrcp.f32 %v555_v23  ;;  %v1516_v24 = vpop.eup %1515  ;;  %v567_v34 = vand.u32 2147483648, %v555_v23  ;;  %v565_v38 = vand.u32 2147483647, %v555_v23  ;;  %vm561_vm5 = vweird.f32 %v555_v23 }
 0x26e   :  { %v580_v26 = vmul.f32 %v1516_v24, %v578_v21  ;;  %vm585_vm8 = vweird.f32 %v1516_v24 }
 0x26f   :  { %v568_v42 = vor.u32 1.1754944e-38, %v567_v34  ;;  %vm566_vm7 = vcmp.eq.f32.partialorder %v565_v38, 8.507059e+37  ;;  %vm586_vm11 = vmor %vm584_vm9, %vm585_vm8 }
 0x270   :  { %v581_v30 = vsub.f32 1.0, %v580_v26 }
 0x272   :  { %v582_v39 = vmul.f32 %v1516_v24, %v581_v30 }
 0x273   :  { %v1518_v28 = vpop.eup %1517 }
 0x274   :  { %v557_v29 = vmul.f32 %v1518_v28, %v555_v23  ;;  %vm562_vm4 = vweird.f32 %v1518_v28  ;;  %v583_v45 = vadd.f32 %v1516_v24, %v582_v39 }
 0x275   :  { %vm563_vm6 = vmor %vm561_vm5, %vm562_vm4 }
 0x276   :  { %v558_v33 = vsub.f32 1.0, %v557_v29  ;;  %v587_v62 = vsel %vm586_vm11, %v1516_v24, %v583_v45 }
 0x277   :  { %v592_v0 = vsel %vm589_vm12, %v591_v63, %v587_v62 }
 0x278   :  { %v559_v36 = vmul.f32 %v1518_v28, %v558_v33  ;;  %v600_v1 = vsub.f32 1.0, %v592_v0  ;;  %v604_v8 = vmul.f32 %v602_v3, %v592_v0 }
 0x27a   :  { %v560_v40 = vadd.f32 %v1518_v28, %v559_v36 }
 0x27c   :  { %v564_v44 = vsel %vm563_vm6, %v1518_v28, %v560_v40 }
 0x27d   :  { %v569_v46 = vsel %vm566_vm7, %v568_v42, %v564_v44  ;;  %vm1342_vm7 = vcmask 1041408  }
 0x27e   :  { %v597_v48 = vmul.f32 %v595_v43, %v569_v46 }
 0x280   :  { %v598_v60 = vadd.f32 %v597_v48, %v1950_v41 }
 0x282   :  { %1519 = vtanh.f32 %v598_v60 }
 0x288   :  { %v1520_v5 = vpop.eup %1519 }
 0x289   :  { %v601_v6 = vmul.f32 %v1520_v5, %v600_v1 }
 0x28b   :  { %v1983_v9 = vadd.f32 %v604_v8, %v601_v6 }
 0x28d   :  { %v607_v11 = vrot.slane %v1983_v9, 2 }
 0x28f   :  { %1451 = vmatmul.msk.f32.vlgmr.msra.gmra.mxu2 %vm250_vm10, %v607_v11  ;;  %1452 = vmatmul.msk.f32.vlgmr.msra.gmra.mxu3 %vm250_vm10, %v607_v11  ;;  %v1989_v14 = vsel %vm1340_vm13, %v1329_v12, %v607_v11  ;;  %v724_v12 = vrot.slane %v1983_v9, 6 }
 0x290   :  { %1453 = vmatmul.msk.f32.vlgmr.msrb.gmra.mxu0 %vm250_vm10, %v607_v11  ;;  %906 = vmatpush.msra.mxu2 %v1860_v55 }
 0x291   :  { %977 = vmatpush.msra.mxu3 %v1819_v20  ;;  %997 = vmatpush.msrb.mxu0 %v1844_v51 }
 0x292   :  { %907 = vmatpush.msra.mxu2 %v1868_v56 }
 0x293   :  { %978 = vmatpush.msra.mxu3 %v1822_v27  ;;  %998 = vmatpush.msrb.mxu0 %v1846_v52 }
 0x294   :  { %908 = vmatpush.msra.mxu2 %v1870_v57 }
 0x295   :  { %979 = vmatpush.msra.mxu3 %v1825_v31  ;;  %999 = vmatpush.msrb.mxu0 %v1856_v53 }
 0x296   :  { %909 = vmatpush.msra.mxu2 %v1874_v58 }
 0x297   :  { %980 = vmatpush.msra.mxu3 %v1834_v49  ;;  %1000 = vmatpush.msrb.mxu0 %v1858_v54 }
 0x30d   :  { %v667_v36 = vpop.f32.mrf.mxu0 }
 0x30e   :  { %v668_v43 = vadd.f32 %v1941_v25, %v667_v36 }
 0x310   :  { %v717_v59 = vrot.slane %v668_v43, 4 }
 0x312   :  { %v627_v4 = vpop.f32.mrf.mxu2  ;;  %v647_v16 = vpop.f32.mrf.mxu3 }
 0x313   :  { %v628_v17 = vadd.f32 %v1913_v61, %v627_v4  ;;  %v648_v18 = vadd.f32 %v1930_v10, %v647_v16 }
 0x315   :  { %v671_v19 = vrot.slane %v628_v17, 4  ;;  %v694_v21 = vrot.slane %v648_v18, 4 }
 0x317   :  { %v673_v22 = vadd.f32 %v671_v19, %v1919_v2  ;;  %v696_v23 = vadd.f32 %v694_v21, %v1934_v15 }
 0x319   :  { %v1454_v24 = vmul.f32 -1.442695, %v673_v22  ;;  %v1455_v26 = vmul.f32 -1.442695, %v696_v23 }
 0x31b   :  { %1521 = vpow2.f32 %v1454_v24 }
 0x31c   :  { %1523 = vpow2.f32 %v1455_v26 }
 0x321   :  { %v1522_v28 = vpop.eup %1521 }
 0x322   :  { %v1524_v29 = vpop.eup %1523  ;;  %v677_v30 = vadd.f32 1.0, %v1522_v28 }
 0x323   :  { %v700_v32 = vadd.f32 1.0, %v1524_v29 }
 0x324   :  { %1525 = vrcp.f32 %v677_v30  ;;  %v689_v40 = vand.u32 2147483648, %v677_v30  ;;  %v687_v45 = vand.u32 2147483647, %v677_v30  ;;  %vm683_vm15 = vweird.f32 %v677_v30 }
 0x325   :  { %1527 = vrcp.f32 %v700_v32  ;;  %v712_v1 = vand.u32 2147483648, %v700_v32  ;;  %vm706_vm4 = vweird.f32 %v700_v32  ;;  %v710_v3 = vand.u32 2147483647, %v700_v32 }
 0x326   :  { %v690_v48 = vor.u32 1.1754944e-38, %v689_v40  ;;  %vm688_vm2 = vcmp.eq.f32.partialorder %v687_v45, 8.507059e+37 }
 0x327   :  { %v713_v8 = vor.u32 1.1754944e-38, %v712_v1  ;;  %vm711_vm6 = vcmp.eq.f32.partialorder %v710_v3, 8.507059e+37 }
 0x32a   :  { %v1526_v33 = vpop.eup %1525 }
 0x32b   :  { %v1528_v34 = vpop.eup %1527  ;;  %v679_v35 = vmul.f32 %v1526_v33, %v677_v30  ;;  %vm684_vm14 = vweird.f32 %v1526_v33 }
 0x32c   :  { %v702_v38 = vmul.f32 %v1528_v34, %v700_v32  ;;  %vm685_vm0 = vmor %vm683_vm15, %vm684_vm14  ;;  %vm707_vm3 = vweird.f32 %v1528_v34 }
 0x32d   :  { %v680_v39 = vsub.f32 1.0, %v679_v35  ;;  %vm708_vm5 = vmor %vm706_vm4, %vm707_vm3 }
 0x32e   :  { %v703_v42 = vsub.f32 1.0, %v702_v38 }
 0x32f   :  { %v681_v44 = vmul.f32 %v1526_v33, %v680_v39 }
 0x330   :  { %v704_v46 = vmul.f32 %v1528_v34, %v703_v42 }
 0x331   :  { %v682_v47 = vadd.f32 %v1526_v33, %v681_v44 }
 0x332   :  { %v705_v63 = vadd.f32 %v1528_v34, %v704_v46 }
 0x333   :  { %v686_v60 = vsel %vm685_vm0, %v1526_v33, %v682_v47 }
 0x334   :  { %v691_v62 = vsel %vm688_vm2, %v690_v48, %v686_v60  ;;  %v709_v6 = vsel %vm708_vm5, %v1528_v34, %v705_v63  ;;  %vm1344_vm2 = vcmask 1042432  }
 0x335   :  { %v719_v0 = vmul.f32 %v717_v59, %v691_v62  ;;  %v714_v11 = vsel %vm711_vm6, %v713_v8, %v709_v6 }
 0x336   :  { %v722_v4 = vsub.f32 1.0, %v714_v11  ;;  %v726_v18 = vmul.f32 %v724_v12, %v714_v11 }
 0x337   :  { %v720_v5 = vadd.f32 %v719_v0, %v1950_v41 }
 0x339   :  { %1529 = vtanh.f32 %v720_v5 }
 0x33f   :  { %v1530_v16 = vpop.eup %1529 }
 0x340   :  { %v723_v17 = vmul.f32 %v1530_v16, %v722_v4 }
 0x342   :  { %v2011_v19 = vadd.f32 %v726_v18, %v723_v17 }
 0x344   :  { %v729_v21 = vrot.slane %v2011_v19, 4  ;;  %v1332_v22 = vrot.slane %v2011_v19, 3 }
 0x346   :  { %1456 = vmatmul.msk.f32.vlgmr.msrb.gmra.mxu1 %vm250_vm10, %v729_v21  ;;  %1457 = vmatmul.msk.f32.vlgmr.msrb.gmra.mxu2 %vm250_vm10, %v729_v21  ;;  %v2018_v23 = vsel %vm1342_vm7, %v1989_v14, %v1332_v22 }
 0x347   :  { %1458 = vmatmul.msk.f32.vlgmr.msrb.gmra.mxu3 %vm250_vm10, %v729_v21  ;;  %1017 = vmatpush.msrb.mxu1 %v1860_v55  ;;  %v846_v21 = vrot.slane %v2011_v19, 6 }
 0x348   :  { %1099 = vmatpush.msrb.mxu2 %v1819_v20  ;;  %1119 = vmatpush.msrb.mxu3 %v1844_v51 }
 0x349   :  { %1018 = vmatpush.msrb.mxu1 %v1868_v56 }
 0x34a   :  { %1100 = vmatpush.msrb.mxu2 %v1822_v27  ;;  %1120 = vmatpush.msrb.mxu3 %v1846_v52 }
 0x34b   :  { %1019 = vmatpush.msrb.mxu1 %v1870_v57 }
 0x34c   :  { %1101 = vmatpush.msrb.mxu2 %v1825_v31  ;;  %1121 = vmatpush.msrb.mxu3 %v1856_v53 }
 0x34d   :  { %1020 = vmatpush.msrb.mxu1 %v1874_v58 }
 0x34e   :  { %1102 = vmatpush.msrb.mxu2 %v1834_v49  ;;  %1122 = vmatpush.msrb.mxu3 %v1858_v54 }
 0x3c3   :  { %v749_v9 = vpop.f32.mrf.mxu1 }
 0x3c4   :  { %v750_v14 = vadd.f32 %v1913_v61, %v749_v9 }
 0x3c6   :  { %v793_v24 = vrot.slane %v750_v14, 2 }
 0x3c8   :  { %v795_v26 = vadd.f32 %v793_v24, %v1919_v2 }
 0x3c9   :  { %v769_v28 = vpop.f32.mrf.mxu2 }
 0x3ca   :  { %v1459_v29 = vmul.f32 -1.442695, %v795_v26  ;;  %v770_v30 = vadd.f32 %v1930_v10, %v769_v28  ;;  %v789_v43 = vpop.f32.mrf.mxu3 }
 0x3cb   :  { %v790_v45 = vadd.f32 %v1941_v25, %v789_v43 }
 0x3cc   :  { %1531 = vpow2.f32 %v1459_v29  ;;  %v816_v32 = vrot.slane %v770_v30, 2 }
 0x3cd   :  { %v839_v0 = vrot.slane %v790_v45, 2 }
 0x3ce   :  { %v818_v33 = vadd.f32 %v816_v32, %v1934_v15 }
 0x3d0   :  { %v1460_v34 = vmul.f32 -1.442695, %v818_v33 }
 0x3d2   :  { %v1532_v35 = vpop.eup %1531  ;;  %1533 = vpow2.f32 %v1460_v34 }
 0x3d3   :  { %v799_v36 = vadd.f32 1.0, %v1532_v35 }
 0x3d5   :  { %1535 = vrcp.f32 %v799_v36  ;;  %v811_v44 = vand.u32 2147483648, %v799_v36  ;;  %v809_v47 = vand.u32 2147483647, %v799_v36  ;;  %vm805_vm9 = vweird.f32 %v799_v36 }
 0x3d7   :  { %v812_v60 = vor.u32 1.1754944e-38, %v811_v44  ;;  %vm810_vm12 = vcmp.eq.f32.partialorder %v809_v47, 8.507059e+37 }
 0x3d8   :  { %v1534_v38 = vpop.eup %1533 }
 0x3d9   :  { %v822_v39 = vadd.f32 1.0, %v1534_v38 }
 0x3db   :  { %v1536_v40 = vpop.eup %1535  ;;  %1537 = vrcp.f32 %v822_v39  ;;  %v834_v5 = vand.u32 2147483648, %v822_v39  ;;  %v832_v8 = vand.u32 2147483647, %v822_v39  ;;  %vm828_vm14 = vweird.f32 %v822_v39 }
 0x3dc   :  { %v801_v42 = vmul.f32 %v1536_v40, %v799_v36  ;;  %vm806_vm8 = vweird.f32 %v1536_v40 }
 0x3dd   :  { %vm807_vm11 = vmor %vm805_vm9, %vm806_vm8  ;;  %v835_v4 = vor.u32 1.1754944e-38, %v834_v5  ;;  %vm833_vm0 = vcmp.eq.f32.partialorder %v832_v8, 8.507059e+37 }
 0x3de   :  { %v802_v2 = vsub.f32 1.0, %v801_v42 }
 0x3e0   :  { %v803_v46 = vmul.f32 %v1536_v40, %v802_v2 }
 0x3e1   :  { %v1538_v48 = vpop.eup %1537 }
 0x3e2   :  { %v824_v15 = vmul.f32 %v1538_v48, %v822_v39  ;;  %v804_v59 = vadd.f32 %v1536_v40, %v803_v46  ;;  %vm829_vm13 = vweird.f32 %v1538_v48 }
 0x3e3   :  { %vm830_vm15 = vmor %vm828_vm14, %vm829_vm13 }
 0x3e4   :  { %v825_v62 = vsub.f32 1.0, %v824_v15  ;;  %v808_v63 = vsel %vm807_vm11, %v1536_v40, %v804_v59  ;;  %v2070_v59 = vadd.f32 %v1947_v37, %v1974_v50 }
 0x3e5   :  { %v813_v1 = vsel %vm810_vm12, %v812_v60, %v808_v63 }
 0x3e6   :  { %v826_v3 = vmul.f32 %v1538_v48, %v825_v62  ;;  %v841_v6 = vmul.f32 %v839_v0, %v813_v1 }
 0x3e8   :  { %v827_v11 = vadd.f32 %v1538_v48, %v826_v3  ;;  %v842_v12 = vadd.f32 %v841_v6, %v1950_v41 }
 0x3ea   :  { %v831_v16 = vsel %vm830_vm15, %v1538_v48, %v827_v11  ;;  %1539 = vtanh.f32 %v842_v12 }
 0x3eb   :  { %v836_v17 = vsel %vm833_vm0, %v835_v4, %v831_v16 }
 0x3ec   :  { %v844_v18 = vsub.f32 1.0, %v836_v17  ;;  %v848_v14 = vmul.f32 %v846_v21, %v836_v17 }
 0x3f0   :  { %v1540_v22 = vpop.eup %1539 }
 0x3f1   :  { %v845_v9 = vmul.f32 %v1540_v22, %v844_v18 }
 0x3f3   :  { %v849_v24 = vadd.f32 %v848_v14, %v845_v9 }
 0x3f5   :  { %v2040_v26 = vrot.slane %v849_v24, 6  ;;  %v1334_v28 = vrot.slane %v849_v24, 4 }
 0x3f7   :  { %1461 = vmatmul.msk.f32.vlgmr.msra.gmra.mxu0 %vm250_vm10, %v2040_v26  ;;  %1462 = vmatmul.msk.f32.vlgmr.msra.gmra.mxu1 %vm250_vm10, %v2040_v26  ;;  %v2047_v41 = vsel %vm1344_vm2, %v2018_v23, %v1334_v28 }
 0x3f8   :  { %1463 = vmatmul.msk.f32.vlgmr.msra.gmra.mxu2 %vm250_vm10, %v2040_v26  ;;  %1139 = vmatpush.msra.mxu0 %v1860_v55 }
 0x3f9   :  { %1221 = vmatpush.msra.mxu1 %v1819_v20  ;;  %1241 = vmatpush.msra.mxu2 %v1844_v51 }
 0x3fa   :  { %1140 = vmatpush.msra.mxu0 %v1868_v56 }
 0x3fb   :  { %1222 = vmatpush.msra.mxu1 %v1822_v27  ;;  %1242 = vmatpush.msra.mxu2 %v1846_v52 }
 0x3fc   :  { %1141 = vmatpush.msra.mxu0 %v1870_v57 }
 0x3fd   :  { %1223 = vmatpush.msra.mxu1 %v1825_v31  ;;  %1243 = vmatpush.msra.mxu2 %v1856_v53 }
 0x3fe   :  { %1142 = vmatpush.msra.mxu0 %v1874_v58 }
 0x3ff   :  { %1224 = vmatpush.msra.mxu1 %v1834_v49  ;;  %1244 = vmatpush.msra.mxu2 %v1858_v54 }
 0x474   :  { %v871_v20 = vpop.f32.mrf.mxu0  ;;  %v891_v51 = vpop.f32.mrf.mxu1 }
 0x475   :  { %v872_v19 = vadd.f32 %v1913_v61, %v871_v20  ;;  %v892_v27 = vadd.f32 %v1930_v10, %v891_v51 }
 0x477   :  { %v914_v52 = vadd.f32 %v872_v19, %v1922_v7  ;;  %v934_v23 = vadd.f32 %v892_v27, %v1932_v13 }
 0x479   :  { %v1464_v29 = vmul.f32 -1.442695, %v914_v52  ;;  %v1465_v31 = vmul.f32 -1.442695, %v934_v23 }
 0x47b   :  { %1541 = vpow2.f32 %v1464_v29  ;;  %v911_v2 = vpop.f32.mrf.mxu2 }
 0x47c   :  { %1543 = vpow2.f32 %v1465_v31  ;;  %v912_v46 = vadd.f32 %v1941_v25, %v911_v2 }
 0x481   :  { %v1542_v53 = vpop.eup %1541 }
 0x482   :  { %v1544_v30 = vpop.eup %1543  ;;  %v918_v32 = vadd.f32 1.0, %v1542_v53 }
 0x483   :  { %v938_v49 = vadd.f32 1.0, %v1544_v30 }
 0x484   :  { %1545 = vrcp.f32 %v918_v32  ;;  %v930_v39 = vand.u32 2147483648, %v918_v32  ;;  %v928_v42 = vand.u32 2147483647, %v918_v32  ;;  %vm924_vm4 = vweird.f32 %v918_v32 }
 0x485   :  { %1547 = vrcp.f32 %v938_v49  ;;  %v950_v60 = vand.u32 2147483648, %v938_v49  ;;  %vm944_vm8 = vweird.f32 %v938_v49  ;;  %v948_v63 = vand.u32 2147483647, %v938_v49 }
 0x486   :  { %v931_v45 = vor.u32 1.1754944e-38, %v930_v39  ;;  %vm929_vm6 = vcmp.eq.f32.partialorder %v928_v42, 8.507059e+37 }
 0x487   :  { %v951_v3 = vor.u32 1.1754944e-38, %v950_v60  ;;  %vm949_vm11 = vcmp.eq.f32.partialorder %v948_v63, 8.507059e+37 }
 0x48a   :  { %v1546_v54 = vpop.eup %1545 }
 0x48b   :  { %v1548_v33 = vpop.eup %1547  ;;  %v920_v34 = vmul.f32 %v1546_v54, %v918_v32  ;;  %vm925_vm3 = vweird.f32 %v1546_v54 }
 0x48c   :  { %v940_v35 = vmul.f32 %v1548_v33, %v938_v49  ;;  %vm926_vm5 = vmor %vm924_vm4, %vm925_vm3  ;;  %vm945_vm7 = vweird.f32 %v1548_v33 }
 0x48d   :  { %v921_v36 = vsub.f32 1.0, %v920_v34  ;;  %vm946_vm9 = vmor %vm944_vm8, %vm945_vm7 }
 0x48e   :  { %v941_v38 = vsub.f32 1.0, %v940_v35 }
 0x48f   :  { %v922_v40 = vmul.f32 %v1546_v54, %v921_v36 }
 0x490   :  { %v942_v43 = vmul.f32 %v1548_v33, %v941_v38 }
 0x491   :  { %v923_v44 = vadd.f32 %v1546_v54, %v922_v40 }
 0x492   :  { %v943_v15 = vadd.f32 %v1548_v33, %v942_v43 }
 0x493   :  { %v927_v47 = vsel %vm926_vm5, %v1546_v54, %v923_v44 }
 0x494   :  { %v932_v48 = vsel %vm929_vm6, %v931_v45, %v927_v47  ;;  %v947_v1 = vsel %vm946_vm9, %v1548_v33, %v943_v15 }
 0x495   :  { %v954_v62 = vmul.f32 %v932_v48, %v912_v46  ;;  %v952_v5 = vsel %vm949_vm11, %v951_v3, %v947_v1 }
 0x496   :  { %v957_v6 = vsub.f32 1.0, %v952_v5  ;;  %v960_v12 = vmul.f32 %v952_v5, %v2040_v26 }
 0x497   :  { %v955_v0 = vadd.f32 %v954_v62, %v2070_v59 }
 0x499   :  { %1549 = vtanh.f32 %v955_v0 }
 0x49f   :  { %v1550_v8 = vpop.eup %1549 }
 0x4a0   :  { %v958_v11 = vmul.f32 %v1550_v8, %v957_v6 }
 0x4a2   :  { %v2074_v4 = vadd.f32 %v960_v12, %v958_v11 }
 0x4a4   :  { %1466 = vmatmul.msk.f32.vlgmr.msra.gmra.mxu3 %vm250_vm10, %v2074_v4  ;;  %1467 = vmatmul.msk.f32.vlgmr.msrb.gmra.mxu0 %vm250_vm10, %v2074_v4  ;;  %v1336_v37 = vrot.slane %v2074_v4, 5  ;;  %v1079_v46 = vrot.slane %v2074_v4, 6 }
 0x4a5   :  { %1468 = vmatmul.msk.f32.vlgmr.msrb.gmra.mxu1 %vm250_vm10, %v2074_v4  ;;  %1261 = vmatpush.msra.mxu3 %v1860_v55 }
 0x4a6   :  { %v2086_v50 = vsel %vm215_vm1, %v2047_v41, %v1336_v37 }
 0x4a7   :  { %1262 = vmatpush.msra.mxu3 %v1868_v56 }
 0x4a9   :  { %1263 = vmatpush.msra.mxu3 %v1870_v57 }
 0x4ab   :  { %1264 = vmatpush.msra.mxu3 %v1874_v58 }
 0x521   :  { %v1002_v16 = vpop.f32.mrf.mxu0 }
 0x522   :  { %v1003_v17 = vadd.f32 %v1930_v10, %v1002_v16  ;;  %v1022_v52 = vpop.f32.mrf.mxu1 }
 0x523   :  { %v1023_v31 = vadd.f32 %v1941_v25, %v1022_v52 }
 0x524   :  { %v1049_v18 = vrot.slane %v1003_v17, 6 }
 0x525   :  { %v1072_v33 = vrot.slane %v1023_v31, 6 }
 0x526   :  { %v1051_v21 = vadd.f32 %v1049_v18, %v1932_v13 }
 0x527   :  { %v982_v22 = vpop.f32.mrf.mxu3 }
 0x528   :  { %v1470_v9 = vmul.f32 -1.442695, %v1051_v21  ;;  %v983_v55 = vadd.f32 %v1913_v61, %v982_v22 }
 0x52a   :  { %1551 = vpow2.f32 %v1470_v9  ;;  %v1026_v14 = vrot.slane %v983_v55, 6 }
 0x52c   :  { %v1028_v24 = vadd.f32 %v1026_v14, %v1922_v7 }
 0x52e   :  { %v1469_v26 = vmul.f32 -1.442695, %v1028_v24 }
 0x530   :  { %v1552_v56 = vpop.eup %1551  ;;  %1553 = vpow2.f32 %v1469_v26 }
 0x531   :  { %v1055_v57 = vadd.f32 1.0, %v1552_v56 }
 0x533   :  { %1555 = vrcp.f32 %v1055_v57  ;;  %v1067_v38 = vand.u32 2147483648, %v1055_v57  ;;  %vm1061_vm0 = vweird.f32 %v1055_v57  ;;  %v1065_v40 = vand.u32 2147483647, %v1055_v57 }
 0x535   :  { %v1068_v2 = vor.u32 1.1754944e-38, %v1067_v38  ;;  %vm1066_vm3 = vcmp.eq.f32.partialorder %v1065_v40, 8.507059e+37 }
 0x536   :  { %v1554_v58 = vpop.eup %1553 }
 0x537   :  { %v1032_v28 = vadd.f32 1.0, %v1554_v58 }
 0x539   :  { %1557 = vrcp.f32 %v1032_v28  ;;  %v1556_v41 = vpop.eup %1555  ;;  %v1044_v29 = vand.u32 2147483648, %v1032_v28  ;;  %v1042_v30 = vand.u32 2147483647, %v1032_v28  ;;  %vm1038_vm12 = vweird.f32 %v1032_v28 }
 0x53a   :  { %v1057_v20 = vmul.f32 %v1556_v41, %v1055_v57  ;;  %vm1062_vm15 = vweird.f32 %v1556_v41 }
 0x53b   :  { %v1045_v54 = vor.u32 1.1754944e-38, %v1044_v29  ;;  %vm1043_vm14 = vcmp.eq.f32.partialorder %v1042_v30, 8.507059e+37  ;;  %vm1063_vm2 = vmor %vm1061_vm0, %vm1062_vm15 }
 0x53c   :  { %v1058_v27 = vsub.f32 1.0, %v1057_v20 }
 0x53e   :  { %v1059_v32 = vmul.f32 %v1556_v41, %v1058_v27 }
 0x53f   :  { %v1558_v51 = vpop.eup %1557 }
 0x540   :  { %v1034_v19 = vmul.f32 %v1558_v51, %v1032_v28  ;;  %vm1039_vm1 = vweird.f32 %v1558_v51  ;;  %v1060_v35 = vadd.f32 %v1556_v41, %v1059_v32 }
 0x541   :  { %vm1040_vm13 = vmor %vm1038_vm12, %vm1039_vm1  ;;  %vm1347_vm12 = vcmask 1044480  }
 0x542   :  { %v1035_v23 = vsub.f32 1.0, %v1034_v19  ;;  %v1064_v43 = vsel %vm1063_vm2, %v1556_v41, %v1060_v35 }
 0x543   :  { %v1069_v44 = vsel %vm1066_vm3, %v1068_v2, %v1064_v43 }
 0x544   :  { %v1036_v53 = vmul.f32 %v1558_v51, %v1035_v23  ;;  %v1077_v45 = vsub.f32 1.0, %v1069_v44  ;;  %v1081_v15 = vmul.f32 %v1079_v46, %v1069_v44 }
 0x546   :  { %v1037_v49 = vadd.f32 %v1558_v51, %v1036_v53 }
 0x548   :  { %v1041_v34 = vsel %vm1040_vm13, %v1558_v51, %v1037_v49  ;;  %vm1349_vm13 = vcmask 1045504  }
 0x549   :  { %v1046_v36 = vsel %vm1043_vm14, %v1045_v54, %v1041_v34 }
 0x54a   :  { %v1074_v39 = vmul.f32 %v1072_v33, %v1046_v36 }
 0x54c   :  { %v1075_v42 = vadd.f32 %v1074_v39, %v2070_v59 }
 0x54e   :  { %1559 = vtanh.f32 %v1075_v42 }
 0x554   :  { %v1560_v47 = vpop.eup %1559 }
 0x555   :  { %v1078_v48 = vmul.f32 %v1560_v47, %v1077_v45 }
 0x557   :  { %v2098_v60 = vadd.f32 %v1081_v15, %v1078_v48 }
 0x559   :  { %v1084_v62 = vrot.slane %v2098_v60, 2  ;;  %v1201_v33 = vrot.slane %v2098_v60, 6 }
 0x55b   :  { %1471 = vmatmul.msk.f32.vlgmr.msrb.gmra.mxu2 %vm250_vm10, %v1084_v62  ;;  %1472 = vmatmul.msk.f32.vlgmr.msrb.gmra.mxu3 %vm250_vm10, %v1084_v62  ;;  %v1348_v43 = vsel %vm1347_vm12, %v2086_v50, %v1201_v33  ;;  %v1355_v50 = vld [vmem:[#allocation8 + $0x10] sm:$0xff] }
 0x55c   :  { %1473 = vmatmul.msk.f32.vlgmr.msra.gmra.mxu0 %vm250_vm10, %v1084_v62  ;;  %v1356_v62 = vld [vmem:[#allocation8 + $0x18] sm:$0xff] }
 0x55d   :  { %1376 = vmatpush.msrb.mxu0 %v1356_v62 }
 0x55f   :  { %1377 = vmatpush.msrb.mxu0 %v1355_v50 }
 0x5d9   :  { %v1144_v55 = vpop.f32.mrf.mxu0 }
 0x5da   :  { %v1145_v57 = vadd.f32 %v1941_v25, %v1144_v55 }
 0x5dc   :  { %v1194_v19 = vrot.slane %v1145_v57, 4 }
 0x5de   :  { %v1104_v63 = vpop.f32.mrf.mxu2  ;;  %v1124_v0 = vpop.f32.mrf.mxu3 }
 0x5df   :  { %v1105_v1 = vadd.f32 %v1913_v61, %v1104_v63  ;;  %v1125_v3 = vadd.f32 %v1930_v10, %v1124_v0  ;;  %v1354_v0 = vld [vmem:[#allocation8 + $0x8] sm:$0xff] }
 0x5e0   :  { %1378 = vmatpush.msrb.mxu0 %v1354_v0 }
 0x5e1   :  { %v1148_v5 = vrot.slane %v1105_v1, 4  ;;  %v1171_v6 = vrot.slane %v1125_v3, 4  ;;  %v1353_v3 = vld [vmem:[#allocation8] sm:$0xff] }
 0x5e2   :  { %1379 = vmatpush.msrb.mxu0 %v1353_v3 }
 0x5e3   :  { %v1150_v8 = vadd.f32 %v1148_v5, %v1922_v7  ;;  %v1173_v11 = vadd.f32 %v1171_v6, %v1932_v13 }
 0x5e5   :  { %v1474_v12 = vmul.f32 -1.442695, %v1150_v8  ;;  %v1475_v4 = vmul.f32 -1.442695, %v1173_v11 }
 0x5e7   :  { %1561 = vpow2.f32 %v1474_v12 }
 0x5e8   :  { %1563 = vpow2.f32 %v1475_v4 }
 0x5ed   :  { %v1562_v37 = vpop.eup %1561 }
 0x5ee   :  { %v1564_v16 = vpop.eup %1563  ;;  %v1154_v17 = vadd.f32 1.0, %v1562_v37 }
 0x5ef   :  { %v1177_v18 = vadd.f32 1.0, %v1564_v16 }
 0x5f0   :  { %1565 = vrcp.f32 %v1154_v17  ;;  %v1166_v26 = vand.u32 2147483648, %v1154_v17  ;;  %v1164_v28 = vand.u32 2147483647, %v1154_v17  ;;  %vm1160_vm5 = vweird.f32 %v1154_v17 }
 0x5f1   :  { %1567 = vrcp.f32 %v1177_v18  ;;  %v1189_v31 = vand.u32 2147483648, %v1177_v18  ;;  %vm1183_vm9 = vweird.f32 %v1177_v18  ;;  %v1187_v53 = vand.u32 2147483647, %v1177_v18 }
 0x5f2   :  { %v1167_v51 = vor.u32 1.1754944e-38, %v1166_v26  ;;  %vm1165_vm7 = vcmp.eq.f32.partialorder %v1164_v28, 8.507059e+37 }
 0x5f3   :  { %v1190_v49 = vor.u32 1.1754944e-38, %v1189_v31  ;;  %vm1188_vm1 = vcmp.eq.f32.partialorder %v1187_v53, 8.507059e+37 }
 0x5f6   :  { %v1566_v21 = vpop.eup %1565 }
 0x5f7   :  { %v1568_v22 = vpop.eup %1567  ;;  %v1156_v9 = vmul.f32 %v1566_v21, %v1154_v17  ;;  %vm1161_vm4 = vweird.f32 %v1566_v21 }
 0x5f8   :  { %v1179_v14 = vmul.f32 %v1568_v22, %v1177_v18  ;;  %vm1162_vm6 = vmor %vm1160_vm5, %vm1161_vm4  ;;  %vm1184_vm8 = vweird.f32 %v1568_v22 }
 0x5f9   :  { %v1157_v24 = vsub.f32 1.0, %v1156_v9  ;;  %vm1185_vm11 = vmor %vm1183_vm9, %vm1184_vm8  ;;  %vm1327_vm8 = vcmask 261126  }
 0x5fa   :  { %v1180_v56 = vsub.f32 1.0, %v1179_v14 }
 0x5fb   :  { %v1158_v58 = vmul.f32 %v1566_v21, %v1157_v24 }
 0x5fc   :  { %v1181_v41 = vmul.f32 %v1568_v22, %v1180_v56 }
 0x5fd   :  { %v1159_v20 = vadd.f32 %v1566_v21, %v1158_v58 }
 0x5fe   :  { %v1182_v23 = vadd.f32 %v1568_v22, %v1181_v41 }
 0x5ff   :  { %v1163_v27 = vsel %vm1162_vm6, %v1566_v21, %v1159_v20 }
 0x600   :  { %v1168_v52 = vsel %vm1165_vm7, %v1167_v51, %v1163_v27  ;;  %v1186_v32 = vsel %vm1185_vm11, %v1568_v22, %v1182_v23  ;;  %vm1351_vm7 = vcmask 1046528  }
 0x601   :  { %v1196_v29 = vmul.f32 %v1194_v19, %v1168_v52  ;;  %v1191_v54 = vsel %vm1188_vm1, %v1190_v49, %v1186_v32 }
 0x602   :  { %v1199_v34 = vsub.f32 1.0, %v1191_v54  ;;  %v1203_v38 = vmul.f32 %v1201_v33, %v1191_v54 }
 0x603   :  { %v1197_v30 = vadd.f32 %v1196_v29, %v2070_v59 }
 0x605   :  { %1569 = vtanh.f32 %v1197_v30 }
 0x60b   :  { %v1570_v35 = vpop.eup %1569 }
 0x60c   :  { %v1200_v36 = vmul.f32 %v1570_v35, %v1199_v34 }
 0x60e   :  { %v2111_v39 = vadd.f32 %v1203_v38, %v1200_v36 }
 0x610   :  { %v1206_v40 = vrot.slane %v2111_v39, 4  ;;  %v1338_v42 = vrot.slane %v2111_v39, 7  ;;  %v1323_v52 = vrot.slane %v2111_v39, 6 }
 0x612   :  { %1476 = vmatmul.msk.f32.vlgmr.msra.gmra.mxu1 %vm250_vm10, %v1206_v40  ;;  %1477 = vmatmul.msk.f32.vlgmr.msra.gmra.mxu2 %vm250_vm10, %v1206_v40  ;;  %v2118_v2 = vsel %vm1349_vm13, %v1348_v43, %v1338_v42 }
 0x613   :  { %1478 = vmatmul.msk.f32.vlgmr.msra.gmra.mxu3 %vm250_vm10, %v1206_v40 }
 0x68f   :  { %v1226_v44 = vpop.f32.mrf.mxu1 }
 0x690   :  { %v1227_v45 = vadd.f32 %v1913_v61, %v1226_v44 }
 0x692   :  { %v1270_v46 = vrot.slane %v1227_v45, 2 }
 0x694   :  { %v1272_v47 = vadd.f32 %v1270_v46, %v1922_v7 }
 0x695   :  { %v1246_v48 = vpop.f32.mrf.mxu2 }
 0x696   :  { %v1479_v15 = vmul.f32 -1.442695, %v1272_v47  ;;  %v1247_v60 = vadd.f32 %v1930_v10, %v1246_v48  ;;  %v1266_v12 = vpop.f32.mrf.mxu3 }
 0x697   :  { %v1267_v16 = vadd.f32 %v1941_v25, %v1266_v12 }
 0x698   :  { %1571 = vpow2.f32 %v1479_v15  ;;  %v1293_v63 = vrot.slane %v1247_v60, 2 }
 0x699   :  { %v1316_v24 = vrot.slane %v1267_v16, 2 }
 0x69a   :  { %v1295_v1 = vadd.f32 %v1293_v63, %v1932_v13 }
 0x69c   :  { %v1480_v5 = vmul.f32 -1.442695, %v1295_v1 }
 0x69e   :  { %v1572_v61 = vpop.eup %1571  ;;  %1573 = vpow2.f32 %v1480_v5 }
 0x69f   :  { %v1276_v7 = vadd.f32 1.0, %v1572_v61 }
 0x6a1   :  { %1575 = vrcp.f32 %v1276_v7  ;;  %v1288_v37 = vand.u32 2147483648, %v1276_v7  ;;  %v1286_v13 = vand.u32 2147483647, %v1276_v7  ;;  %vm1282_vm15 = vweird.f32 %v1276_v7 }
 0x6a3   :  { %v1289_v9 = vor.u32 1.1754944e-38, %v1288_v37  ;;  %vm1287_vm2 = vcmp.eq.f32.partialorder %v1286_v13, 8.507059e+37 }
 0x6a4   :  { %v1574_v6 = vpop.eup %1573 }
 0x6a5   :  { %v1299_v8 = vadd.f32 1.0, %v1574_v6 }
 0x6a7   :  { %v1576_v10 = vpop.eup %1575  ;;  %1577 = vrcp.f32 %v1299_v8  ;;  %v1311_v58 = vand.u32 2147483648, %v1299_v8  ;;  %v1309_v28 = vand.u32 2147483647, %v1299_v8  ;;  %vm1305_vm4 = vweird.f32 %v1299_v8 }
 0x6a8   :  { %v1278_v11 = vmul.f32 %v1576_v10, %v1276_v7  ;;  %vm1283_vm14 = vweird.f32 %v1576_v10 }
 0x6a9   :  { %vm1284_vm0 = vmor %vm1282_vm15, %vm1283_vm14  ;;  %v1312_v51 = vor.u32 1.1754944e-38, %v1311_v58  ;;  %vm1310_vm6 = vcmp.eq.f32.partialorder %v1309_v28, 8.507059e+37 }
 0x6aa   :  { %v1279_v4 = vsub.f32 1.0, %v1278_v11 }
 0x6ac   :  { %v1280_v17 = vmul.f32 %v1576_v10, %v1279_v4 }
 0x6ad   :  { %v1578_v18 = vpop.eup %1577 }
 0x6ae   :  { %v1301_v21 = vmul.f32 %v1578_v18, %v1299_v8  ;;  %v1281_v22 = vadd.f32 %v1576_v10, %v1280_v17  ;;  %vm1306_vm3 = vweird.f32 %v1578_v18 }
 0x6af   :  { %vm1307_vm5 = vmor %vm1305_vm4, %vm1306_vm3 }
 0x6b0   :  { %v1302_v55 = vsub.f32 1.0, %v1301_v21  ;;  %v1285_v14 = vsel %vm1284_vm0, %v1576_v10, %v1281_v22 }
 0x6b1   :  { %v1290_v26 = vsel %vm1287_vm2, %v1289_v9, %v1285_v14 }
 0x6b2   :  { %v1303_v56 = vmul.f32 %v1578_v18, %v1302_v55  ;;  %v1318_v57 = vmul.f32 %v1316_v24, %v1290_v26 }
 0x6b4   :  { %v1319_v25 = vadd.f32 %v1318_v57, %v2070_v59  ;;  %v1304_v41 = vadd.f32 %v1578_v18, %v1303_v56  ;;  %v1500_v59 = vld [vmem:[%s2147_s8] ss:$0 sm:$0xff] }
 0x6b6   :  { %1579 = vtanh.f32 %v1319_v25  ;;  %v1308_v20 = vsel %vm1307_vm5, %v1578_v18, %v1304_v41 }
 0x6b7   :  { %v1313_v19 = vsel %vm1310_vm6, %v1312_v51, %v1308_v20 }
 0x6b8   :  { %v1321_v27 = vsub.f32 1.0, %v1313_v19  ;;  %v1325_v31 = vmul.f32 %v1323_v52, %v1313_v19 }
 0x6bc   :  { %v1580_v23 = vpop.eup %1579 }
 0x6bd   :  { %v1322_v29 = vmul.f32 %v1580_v23, %v1321_v27 }
 0x6bf   :  { %v1326_v53 = vadd.f32 %v1325_v31, %v1322_v29 }
 0x6c1   :  { %v1352_v30 = vsel %vm1351_vm7, %v2118_v2, %v1326_v53  ;;  %1328 = vst.msk [vmem:[#allocation11 - $0x6] sm:$0xc0] %vm1327_vm8, %v1326_v53 }
 0x6c2   :  { %1481 = vmatmul.msk.f32.vlgmr.msrb.gmra.mxu0 %vm250_vm10, %v1352_v30  ;;  %1406 = dma.vmem_to_hbm [thread:$0]  %s1402_s6, 32, %s1404_s27, [#allocation12]  }
 0x73f   :  { %v1381_v32 = vpop.f32.mrf.mxu0 }
 0x740   :  { %v1382_v49 = vadd.f32 %v1500_v59, %v1381_v32 }
 0x742   :  { %1384 = vst [vmem:[#allocation10] sm:$0xff] %v1382_v49 }
 0x743   :  { %1395 = dma.vmem_to_hbm [thread:$0]  %s1391_s30, 128, %s1393_s12, [#allocation4]  }
 0x744   :  { %1731 = dma.done.wait [#allocation4], 128  }
 0x745   :  { %1732 = vsyncadd [#allocation4], 4294967168 }
 0x746   :  { %1733 = dma.done.wait [#allocation12], 32  }
 0x747   :  { %1734 = vsyncadd [#allocation12], 4294967264 }
 0x748   :  { %1415 = vsyncpa [#allocation3], 1 }
 0x749   :  { %1416 = vsyncpa [#allocation6], 1 }
 0x74a   :  { %1417 = vsyncpa [#allocation9], 1 }
 0x74b   :  { %1418 = vsyncpa [#allocation4], 1 }
 0x74c   :  { %1419 = vsyncpa [#allocation12], 1 }

</bundles_post_ra>
